<compile_context>
chip_gen: v6e
topology: v6e:2x2x1
jax: 0.10.0
libtpu: 0.0.40
codegen_flags: <defaults>
</compile_context>

<pallas_src>
import functools

import jax
import jax.numpy as jnp
import numpy as np
from jax import lax
from jax.experimental import pallas as pl
from jax.experimental.pallas import tpu as pltpu

EXPANSION = 4
BN_EPS = 1e-5


def _bottleneck_kernel(*refs, W, P, C4, TH, num_tiles, has_shortcut):
    if has_shortcut:
        (x_ref, kl_ref, kr_ref, s1_ref, b1_ref, w1_ref, wsc_ref,
         b2_ref, w2_ref, b3_ref, w3_ref, out_ref, tap_ref) = refs
    else:
        (x_ref, kl_ref, kr_ref, s1_ref, b1_ref, w1_ref,
         b2_ref, w2_ref, b3_ref, w3_ref, out_ref, tap_ref) = refs
        wsc_ref = None

    Cin = x_ref.shape[-1]
    THW = TH * W
    t = pl.program_id(1)
    r0 = pl.multiple_of(t * TH, TH)          # first image row of this tile

    s1 = s1_ref[...]                         # (1, Cin) bn1 scale
    b1 = b1_ref[...]                         # (1, Cin) bn1 shift
    b2 = b2_ref[...]                         # (1, P)   bn2 shift (scale folded in w1)
    kl = kl_ref[...]                         # (THW, 1) keep-mask, 0. where col == 0
    kr = kr_ref[...]                         # (THW, 1) keep-mask, 0. where col == W-1

    def h_of(xs):
        """bn1 + relu + conv1 (bn2 scale folded) + bn2 shift + relu."""
        o = jnp.maximum(xs * s1 + b1, 0.0)
        c = jnp.dot(o.astype(jnp.bfloat16), w1_ref[...],
                    preferred_element_type=jnp.float32)
        return jnp.maximum(c + b2, 0.0)

    def store_taps(row, hrow, keep_l, keep_r):
        """Write the three kw taps of one h row into the tap scratch."""
        n = hrow.shape[0]
        tap_ref[0, row] = (pltpu.roll(hrow, shift=1, axis=0) * keep_l
                           ).astype(jnp.bfloat16)            # h[., j-1]
        tap_ref[1, row] = hrow.astype(jnp.bfloat16)           # h[., j]
        tap_ref[2, row] = (pltpu.roll(hrow, shift=n - 1, axis=0) * keep_r
                           ).astype(jnp.bfloat16)             # h[., j+1]

    # ---- halo rows 0 and TH+1 of the tap scratch (zero at the image border,
    #      recomputed from the resident x block otherwise) ----
    if num_tiles == 1:
        z = jnp.zeros((W, P), jnp.bfloat16)
        for kw in range(3):
            tap_ref[kw, 0] = z
            tap_ref[kw, TH + 1] = z
    else:
        kl_row = kl[0:W]                      # column pattern of a single row
        kr_row = kr[0:W]

        @pl.when(t == 0)
        def _():
            z = jnp.zeros((W, P), jnp.bfloat16)
            for kw in range(3):
                tap_ref[kw, 0] = z

        @pl.when(t > 0)
        def _():
            xrow = x_ref[0, pl.ds(r0 - 1, 1)].reshape(W, Cin)
            store_taps(0, h_of(xrow), kl_row, kr_row)

        @pl.when(t == num_tiles - 1)
        def _():
            z = jnp.zeros((W, P), jnp.bfloat16)
            for kw in range(3):
                tap_ref[kw, TH + 1] = z

        @pl.when(t < num_tiles - 1)
        def _():
            xrow = x_ref[0, pl.ds(r0 + TH, 1)].reshape(W, Cin)
            store_taps(TH + 1, h_of(xrow), kl_row, kr_row)

    # ---- tile body: bn1 + relu, conv1 1x1 (+ projection shortcut 1x1) ----
    x = x_ref[0, pl.ds(r0, TH)].reshape(THW, Cin)            # f32
    o = jnp.maximum(x * s1 + b1, 0.0)
    o_bf = o.astype(jnp.bfloat16)

    c1 = jnp.dot(o_bf, w1_ref[...], preferred_element_type=jnp.float32)
    if has_shortcut:
        shortcut = jnp.dot(o_bf, wsc_ref[...],
                           preferred_element_type=jnp.float32)   # (THW, C4) f32

    h = jnp.maximum(c1 + b2, 0.0)                            # (THW, P) f32

    # kw taps via XLU roll + precomputed column keep-masks (no iota/%W per step).
    h_l = pltpu.roll(h, shift=1, axis=0) * kl                # h[i, j-1]
    h_r = pltpu.roll(h, shift=THW - 1, axis=0) * kr          # h[i, j+1]
    hl_bf = h_l.astype(jnp.bfloat16)
    hc_bf = h.astype(jnp.bfloat16)
    hr_bf = h_r.astype(jnp.bfloat16)

    tap_ref[0, 1:TH + 1] = hl_bf.reshape(TH, W, P)
    tap_ref[1, 1:TH + 1] = hc_bf.reshape(TH, W, P)
    tap_ref[2, 1:TH + 1] = hr_bf.reshape(TH, W, P)

    # ---- conv2 3x3 (stride 1, pad 1): centre-row taps straight from
    #      registers, kh=0/2 taps are clean leading-axis slices of the scratch.
    acc = jnp.dot(hl_bf, w2_ref[1, 0], preferred_element_type=jnp.float32)
    acc = acc + jnp.dot(hc_bf, w2_ref[1, 1], preferred_element_type=jnp.float32)
    acc = acc + jnp.dot(hr_bf, w2_ref[1, 2], preferred_element_type=jnp.float32)
    for kh in (0, 2):
        for kw in range(3):
            tap = tap_ref[kw, kh:kh + TH].reshape(THW, P)
            acc = acc + jnp.dot(tap, w2_ref[kh, kw],
                                preferred_element_type=jnp.float32)

    # ---- bn3 shift (scale folded in w2) + relu, conv3 1x1, residual add ----
    h3 = jnp.maximum(acc + b3_ref[...], 0.0)
    c3 = jnp.dot(h3.astype(jnp.bfloat16), w3_ref[...],
                 preferred_element_type=jnp.float32)         # (THW, C4)

    if has_shortcut:
        out_ref[0] = (shortcut + c3).reshape(TH, W, C4)
    else:
        # Identity shortcut: re-read the resident x block (no f32 round trip).
        out_ref[0] = x_ref[0, pl.ds(r0, TH)] + c3.reshape(TH, W, C4)


def _fold_bn(gamma, beta, mean, var):
    scale = gamma / jnp.sqrt(var + BN_EPS)
    shift = beta - mean * scale
    return scale, shift                                      # (C,), (C,)


def _whole_spec(shape):
    nd = len(shape)

    def imap(n, t):
        return (0,) * nd

    return pl.BlockSpec(shape, imap)


def _vmem_limit_bytes():
    # Per-generation budget: ~half of physical VMEM (v7x: 32 MiB of 64 MiB,
    # v5e/v6e: 64 MiB of 128 MiB); conservative fallback if the query fails.
    try:
        cap = int(pltpu.get_tpu_info().vmem_capacity_bytes)
    except Exception:
        cap = 64 * 1024 * 1024
    return max(16 * 1024 * 1024, min(cap // 2, 64 * 1024 * 1024))


def preact_bottleneck_forward(x_nchw, params, stride=1, tile_h=None):
    assert stride == 1, "fused kernel instantiated for stride=1"
    N, Cin, H, W = x_nchw.shape
    planes = params["conv1"].shape[0]
    C4 = EXPANSION * planes
    has_shortcut = (stride != 1) or (Cin != C4)

    if tile_h is None:
        tile_h = 8 if (H % 8 == 0 and H > 8) else H
    assert H % tile_h == 0, "H must be divisible by the spatial tile height"
    num_tiles = H // tile_h
    THW = tile_h * W

    # NCHW -> NHWC (channels on the 128-lane axis).
    x = jnp.transpose(x_nchw, (0, 2, 3, 1)).astype(jnp.float32)

    s1, b1 = _fold_bn(*params["bn1"])
    s2, b2 = _fold_bn(*params["bn2"])
    s3, b3 = _fold_bn(*params["bn3"])

    # conv1 1x1 with bn2 scale folded into its output channels.        (Cin, P)
    w1 = (params["conv1"][:, :, 0, 0].T * s2[None, :]).astype(jnp.bfloat16)
    # conv2 3x3: OIHW -> (kh, kw, I, O) with bn3 scale folded into O. (3,3,P,P)
    w2 = (jnp.transpose(params["conv2"], (2, 3, 1, 0)) * s3).astype(jnp.bfloat16)
    # conv3 1x1.                                                        (P, C4)
    w3 = params["conv3"][:, :, 0, 0].T.astype(jnp.bfloat16)

    # Column-edge keep masks for the conv2 kw taps, hoisted out of the kernel.
    col = jnp.arange(THW, dtype=jnp.int32) % W
    kl = (col != 0).astype(jnp.float32).reshape(THW, 1)
    kr = (col != W - 1).astype(jnp.float32).reshape(THW, 1)

    inputs = [x, kl, kr, s1[None, :], b1[None, :], w1]
    if has_shortcut:
        wsc = params["shortcut"][:, :, 0, 0].T.astype(jnp.bfloat16)    # (Cin, C4)
        inputs.append(wsc)
    inputs += [b2[None, :], w2, b3[None, :], w3]

    in_specs = [pl.BlockSpec((1, H, W, Cin), lambda n, t: (n, 0, 0, 0))]
    in_specs += [_whole_spec(a.shape) for a in inputs[1:]]

    kernel = functools.partial(
        _bottleneck_kernel, W=W, P=planes, C4=C4, TH=tile_h,
        num_tiles=num_tiles, has_shortcut=has_shortcut)

    out_nhwc = pl.pallas_call(
        kernel,
        out_shape=jax.ShapeDtypeStruct((N, H, W, C4), jnp.float32),
        grid=(N, num_tiles),
        in_specs=in_specs,
        out_specs=pl.BlockSpec((1, tile_h, W, C4), lambda n, t: (n, t, 0, 0)),
        scratch_shapes=[pltpu.VMEM((3, tile_h + 2, W, planes), jnp.bfloat16)],
        compiler_params=pltpu.CompilerParams(
            dimension_semantics=("parallel", "parallel"),
            vmem_limit_bytes=_vmem_limit_bytes()),
    )(*inputs)

    return jnp.transpose(out_nhwc, (0, 3, 1, 2))                       # NHWC -> NCHW


# ----------------------- deterministic parameter init -----------------------
def init_params(key, in_planes, planes, stride=1):
    ks = jax.random.split(key, 8)

    def bn(k, c):
        k1, k2, k3, k4 = jax.random.split(k, 4)
        gamma = 1.0 + 0.1 * jax.random.normal(k1, (c,), jnp.float32)
        beta = 0.1 * jax.random.normal(k2, (c,), jnp.float32)
        mean = 0.1 * jax.random.normal(k3, (c,), jnp.float32)
        var = 0.5 + jax.random.uniform(k4, (c,), jnp.float32)
        return (gamma, beta, mean, var)

    p = {}
    p["bn1"] = bn(ks[0], in_planes)
    p["conv1"] = 0.2 * jax.random.normal(ks[1], (planes, in_planes, 1, 1), jnp.float32)
    p["bn2"] = bn(ks[2], planes)
    p["conv2"] = 0.2 * jax.random.normal(ks[3], (planes, planes, 3, 3), jnp.float32)
    p["bn3"] = bn(ks[4], planes)
    p["conv3"] = 0.2 * jax.random.normal(
        ks[5], (EXPANSION * planes, planes, 1, 1), jnp.float32)
    if stride != 1 or in_planes != EXPANSION * planes:
        p["shortcut"] = 0.2 * jax.random.normal(
            ks[6], (EXPANSION * planes, in_planes, 1, 1), jnp.float32)
    return p


# ------------------------- plain-JAX reference check ------------------------
def ref_forward(x, p, stride=1):
    def bn(t, prm):
        g, b, m, v = prm
        sc = (g / jnp.sqrt(v + BN_EPS))[None, :, None, None]
        return (t - m[None, :, None, None]) * sc + b[None, :, None, None]

    dn = ("NCHW", "OIHW", "NCHW")
    out = jax.nn.relu(bn(x, p["bn1"]))
    if "shortcut" in p:
        shortcut = lax.conv_general_dilated(out, p["shortcut"], (stride, stride),
                                            "VALID", dimension_numbers=dn)
    else:
        shortcut = x
    o = lax.conv_general_dilated(out, p["conv1"], (1, 1), "VALID",
                                 dimension_numbers=dn)
    o = lax.conv_general_dilated(jax.nn.relu(bn(o, p["bn2"])), p["conv2"],
                                 (stride, stride), ((1, 1), (1, 1)),
                                 dimension_numbers=dn)
    o = lax.conv_general_dilated(jax.nn.relu(bn(o, p["bn3"])), p["conv3"],
                                 (1, 1), "VALID", dimension_numbers=dn)
    return o + shortcut


if __name__ == "__main__":
    key = jax.random.PRNGKey(0)
    kx1, kp1, kx2, kp2 = jax.random.split(key, 4)
    TOL = dict(rtol=3e-2, atol=3e-2)   # bf16 MXU matmuls vs f32 reference

    # Case 1: projection shortcut, tiled spatial grid (H=16, TH=8 -> 2 tiles).
    in_planes, planes, stride = 4, 4, 1
    x1 = jax.random.normal(kx1, (2, in_planes, 16, 16), jnp.float32)
    p1 = init_params(kp1, in_planes, planes, stride)
    out1 = jax.block_until_ready(preact_bottleneck_forward(x1, p1, stride))
    ref1 = ref_forward(x1, p1, stride)
    assert out1.shape == ref1.shape == (2, EXPANSION * planes, 16, 16)
    np.testing.assert_allclose(np.asarray(out1), np.asarray(ref1), **TOL)

    # Case 1b: same block, single spatial tile (exercises the boundary path).
    out1b = jax.block_until_ready(
        preact_bottleneck_forward(x1, p1, stride, tile_h=16))
    np.testing.assert_allclose(np.asarray(out1b), np.asarray(ref1), **TOL)

    # Case 2: identity shortcut (in_planes == expansion*planes), tiled.
    in_planes2, planes2 = 16, 4
    x2 = jax.random.normal(kx2, (2, in_planes2, 16, 16), jnp.float32)
    p2 = init_params(kp2, in_planes2, planes2, 1)
    out2 = jax.block_until_ready(preact_bottleneck_forward(x2, p2, 1))
    ref2 = ref_forward(x2, p2, 1)
    assert out2.shape == ref2.shape == (2, EXPANSION * planes2, 16, 16)
    np.testing.assert_allclose(np.asarray(out2), np.asarray(ref2), **TOL)

    print("KERNEL_OK")
</pallas_src>

<mosaic_0001>
module attributes {stable_mosaic.version = 11 : i64} {
  func.func @_bottleneck_kernel(%arg0: i32, %arg1: i32, %arg2: memref<1x16x16x4xf32, #tpu.memory_space<vmem>>, %arg3: memref<128x1xf32, #tpu.memory_space<vmem>>, %arg4: memref<128x1xf32, #tpu.memory_space<vmem>>, %arg5: memref<1x4xf32, #tpu.memory_space<vmem>>, %arg6: memref<1x4xf32, #tpu.memory_space<vmem>>, %arg7: memref<4x4xbf16, #tpu.memory_space<vmem>>, %arg8: memref<4x16xbf16, #tpu.memory_space<vmem>>, %arg9: memref<1x4xf32, #tpu.memory_space<vmem>>, %arg10: memref<3x3x4x4xbf16, #tpu.memory_space<vmem>>, %arg11: memref<1x4xf32, #tpu.memory_space<vmem>>, %arg12: memref<4x16xbf16, #tpu.memory_space<vmem>>, %arg13: memref<1x8x16x16xf32, #tpu.memory_space<vmem>>, %arg14: memref<3x10x16x4xbf16, #tpu.memory_space<vmem>>) attributes {dimension_semantics = [#tpu.dimension_semantics<parallel>, #tpu.dimension_semantics<parallel>], iteration_bounds = array<i64: 2, 2>, scalar_prefetch = 0 : i64, scratch_operands = 1 : i64, tpu.core_type = #tpu.core_type<tc>, window_params = [{transform_indices = @transform_0, window_bounds = array<i64: 1, 16, 16, 4>}, {pipeline_mode = #tpu.pipeline_mode<synchronous>, transform_indices = @transform_1, window_bounds = array<i64: 128, 1>}, {pipeline_mode = #tpu.pipeline_mode<synchronous>, transform_indices = @transform_2, window_bounds = array<i64: 128, 1>}, {pipeline_mode = #tpu.pipeline_mode<synchronous>, transform_indices = @transform_3, window_bounds = array<i64: 1, 4>}, {pipeline_mode = #tpu.pipeline_mode<synchronous>, transform_indices = @transform_4, window_bounds = array<i64: 1, 4>}, {pipeline_mode = #tpu.pipeline_mode<synchronous>, transform_indices = @transform_5, window_bounds = array<i64: 4, 4>}, {pipeline_mode = #tpu.pipeline_mode<synchronous>, transform_indices = @transform_6, window_bounds = array<i64: 4, 16>}, {pipeline_mode = #tpu.pipeline_mode<synchronous>, transform_indices = @transform_7, window_bounds = array<i64: 1, 4>}, {pipeline_mode = #tpu.pipeline_mode<synchronous>, transform_indices = @transform_8, window_bounds = array<i64: 3, 3, 4, 4>}, {pipeline_mode = #tpu.pipeline_mode<synchronous>, transform_indices = @transform_9, window_bounds = array<i64: 1, 4>}, {pipeline_mode = #tpu.pipeline_mode<synchronous>, transform_indices = @transform_10, window_bounds = array<i64: 4, 16>}, {transform_indices = @transform_11, window_bounds = array<i64: 1, 8, 16, 16>}]} {
    %c8_i32 = arith.constant 8 : i32
    %0 = arith.muli %arg1, %c8_i32 : i32
    %1 = tpu.assume_multiple %0, 8 : i32
    %c0 = arith.constant 0 : index
    %c0_0 = arith.constant 0 : index
    %2 = vector.load %arg5[%c0, %c0_0] : memref<1x4xf32, #tpu.memory_space<vmem>>, vector<1x4xf32>
    %c0_1 = arith.constant 0 : index
    %c0_2 = arith.constant 0 : index
    %3 = vector.load %arg6[%c0_1, %c0_2] : memref<1x4xf32, #tpu.memory_space<vmem>>, vector<1x4xf32>
    %c0_3 = arith.constant 0 : index
    %c0_4 = arith.constant 0 : index
    %4 = vector.load %arg9[%c0_3, %c0_4] : memref<1x4xf32, #tpu.memory_space<vmem>>, vector<1x4xf32>
    %c0_5 = arith.constant 0 : index
    %c0_6 = arith.constant 0 : index
    %5 = vector.load %arg3[%c0_5, %c0_6] : memref<128x1xf32, #tpu.memory_space<vmem>>, vector<128x1xf32>
    %c0_7 = arith.constant 0 : index
    %c0_8 = arith.constant 0 : index
    %6 = vector.load %arg4[%c0_7, %c0_8] : memref<128x1xf32, #tpu.memory_space<vmem>>, vector<128x1xf32>
    %7 = vector.extract_strided_slice %5 {offsets = [0, 0], sizes = [16, 1], strides = [1, 1]} : vector<128x1xf32> to vector<16x1xf32>
    %8 = vector.extract_strided_slice %6 {offsets = [0, 0], sizes = [16, 1], strides = [1, 1]} : vector<128x1xf32> to vector<16x1xf32>
    %c0_i32 = arith.constant 0 : i32
    %9 = arith.cmpi eq, %arg1, %c0_i32 : i32
    %10 = arith.extui %9 : i1 to i32
    %c0_i32_9 = arith.constant 0 : i32
    %11 = arith.cmpi ne, %10, %c0_i32_9 : i32
    scf.if %11 {
      %cst_115 = arith.constant 0.000000e+00 : bf16
      %127 = vector.broadcast %cst_115 : bf16 to vector<16x4xbf16>
      %c0_116 = arith.constant 0 : index
      %c0_117 = arith.constant 0 : index
      %c0_118 = arith.constant 0 : index
      %c0_119 = arith.constant 0 : index
      %128 = vector.load %arg14[%c0_116, %c0_117, %c0_118, %c0_119] : memref<3x10x16x4xbf16, #tpu.memory_space<vmem>>, vector<1x1x16x4xbf16>
      %129 = vector.shape_cast %128 : vector<1x1x16x4xbf16> to vector<16x4xbf16>
      %130 = vector.shape_cast %127 : vector<16x4xbf16> to vector<1x1x16x4xbf16>
      tpu.vector_store %arg14[%c0_116, %c0_117, %c0_118, %c0_119], %130 {strides = array<i32>} : memref<3x10x16x4xbf16, #tpu.memory_space<vmem>>, vector<1x1x16x4xbf16>,
      %c1_120 = arith.constant 1 : index
      %c0_121 = arith.constant 0 : index
      %c0_122 = arith.constant 0 : index
      %c0_123 = arith.constant 0 : index
      %131 = vector.load %arg14[%c1_120, %c0_121, %c0_122, %c0_123] : memref<3x10x16x4xbf16, #tpu.memory_space<vmem>>, vector<1x1x16x4xbf16>
      %132 = vector.shape_cast %131 : vector<1x1x16x4xbf16> to vector<16x4xbf16>
      %133 = vector.shape_cast %127 : vector<16x4xbf16> to vector<1x1x16x4xbf16>
      tpu.vector_store %arg14[%c1_120, %c0_121, %c0_122, %c0_123], %133 {strides = array<i32>} : memref<3x10x16x4xbf16, #tpu.memory_space<vmem>>, vector<1x1x16x4xbf16>,
      %c2_124 = arith.constant 2 : index
      %c0_125 = arith.constant 0 : index
      %c0_126 = arith.constant 0 : index
      %c0_127 = arith.constant 0 : index
      %134 = vector.load %arg14[%c2_124, %c0_125, %c0_126, %c0_127] : memref<3x10x16x4xbf16, #tpu.memory_space<vmem>>, vector<1x1x16x4xbf16>
      %135 = vector.shape_cast %134 : vector<1x1x16x4xbf16> to vector<16x4xbf16>
      %136 = vector.shape_cast %127 : vector<16x4xbf16> to vector<1x1x16x4xbf16>
      tpu.vector_store %arg14[%c2_124, %c0_125, %c0_126, %c0_127], %136 {strides = array<i32>} : memref<3x10x16x4xbf16, #tpu.memory_space<vmem>>, vector<1x1x16x4xbf16>,
    } else {
    }
    %c0_i32_10 = arith.constant 0 : i32
    %12 = arith.cmpi sgt, %arg1, %c0_i32_10 : i32
    %13 = arith.extui %12 : i1 to i32
    %c0_i32_11 = arith.constant 0 : i32
    %14 = arith.cmpi ne, %13, %c0_i32_11 : i32
    scf.if %14 {
      %c1_i32_115 = arith.constant 1 : i32
      %127 = arith.subi %1, %c1_i32_115 : i32
      %c0_116 = arith.constant 0 : index
      %128 = arith.index_cast %127 : i32 to index
      %c0_117 = arith.constant 0 : index
      %c0_118 = arith.constant 0 : index
      %129 = vector.load %arg2[%c0_116, %128, %c0_117, %c0_118] : memref<1x16x16x4xf32, #tpu.memory_space<vmem>>, vector<1x1x16x4xf32>
      %130 = vector.shape_cast %129 : vector<1x1x16x4xf32> to vector<1x16x4xf32>
      %131 = vector.shape_cast %130 : vector<1x16x4xf32> to vector<16x4xf32>
      %132 = vector.broadcast %2 : vector<1x4xf32> to vector<16x4xf32>
      %133 = arith.mulf %131, %132 : vector<16x4xf32>
      %134 = vector.broadcast %3 : vector<1x4xf32> to vector<16x4xf32>
      %135 = arith.addf %133, %134 : vector<16x4xf32>
      %cst_119 = arith.constant 0.000000e+00 : f32
      %136 = vector.broadcast %cst_119 : f32 to vector<16x4xf32>
      %137 = arith.maximumf %135, %136 : vector<16x4xf32>
      %138 = arith.truncf %137 : vector<16x4xf32> to vector<16x4xbf16>
      %c0_120 = arith.constant 0 : index
      %c0_121 = arith.constant 0 : index
      %139 = vector.load %arg7[%c0_120, %c0_121] : memref<4x4xbf16, #tpu.memory_space<vmem>>, vector<4x4xbf16>
      %cst_122 = arith.constant dense<0.000000e+00> : vector<16x4xf32>
      %140 = tpu.matmul %138, %139, %cst_122 {dimension_numbers = #tpu.dot_dimension_numbers<[1], [0], [0], [1], [0, 0, 1, 1], [], []>} : vector<16x4xbf16>, vector<4x4xbf16>, vector<16x4xf32> -> vector<16x4xf32>
      %141 = vector.broadcast %4 : vector<1x4xf32> to vector<16x4xf32>
      %142 = arith.addf %140, %141 : vector<16x4xf32>
      %cst_123 = arith.constant 0.000000e+00 : f32
      %143 = vector.broadcast %cst_123 : f32 to vector<16x4xf32>
      %144 = arith.maximumf %142, %143 : vector<16x4xf32>
      %c1_i32_124 = arith.constant 1 : i32
      %145 = tpu.dynamic_rotate %144 by %c1_i32_124 dim 0 : vector<16x4xf32>, i32 -> vector<16x4xf32>
      %146 = vector.broadcast %7 : vector<16x1xf32> to vector<16x4xf32>
      %147 = arith.mulf %145, %146 : vector<16x4xf32>
      %148 = arith.truncf %147 : vector<16x4xf32> to vector<16x4xbf16>
      %c0_125 = arith.constant 0 : index
      %c0_126 = arith.constant 0 : index
      %c0_127 = arith.constant 0 : index
      %c0_128 = arith.constant 0 : index
      %149 = vector.load %arg14[%c0_125, %c0_126, %c0_127, %c0_128] : memref<3x10x16x4xbf16, #tpu.memory_space<vmem>>, vector<1x1x16x4xbf16>
      %150 = vector.shape_cast %149 : vector<1x1x16x4xbf16> to vector<16x4xbf16>
      %151 = vector.shape_cast %148 : vector<16x4xbf16> to vector<1x1x16x4xbf16>
      tpu.vector_store %arg14[%c0_125, %c0_126, %c0_127, %c0_128], %151 {strides = array<i32>} : memref<3x10x16x4xbf16, #tpu.memory_space<vmem>>, vector<1x1x16x4xbf16>,
      %152 = arith.truncf %144 : vector<16x4xf32> to vector<16x4xbf16>
      %c1_129 = arith.constant 1 : index
      %c0_130 = arith.constant 0 : index
      %c0_131 = arith.constant 0 : index
      %c0_132 = arith.constant 0 : index
      %153 = vector.load %arg14[%c1_129, %c0_130, %c0_131, %c0_132] : memref<3x10x16x4xbf16, #tpu.memory_space<vmem>>, vector<1x1x16x4xbf16>
      %154 = vector.shape_cast %153 : vector<1x1x16x4xbf16> to vector<16x4xbf16>
      %155 = vector.shape_cast %152 : vector<16x4xbf16> to vector<1x1x16x4xbf16>
      tpu.vector_store %arg14[%c1_129, %c0_130, %c0_131, %c0_132], %155 {strides = array<i32>} : memref<3x10x16x4xbf16, #tpu.memory_space<vmem>>, vector<1x1x16x4xbf16>,
      %c15_i32 = arith.constant 15 : i32
      %156 = tpu.dynamic_rotate %144 by %c15_i32 dim 0 : vector<16x4xf32>, i32 -> vector<16x4xf32>
      %157 = vector.broadcast %8 : vector<16x1xf32> to vector<16x4xf32>
      %158 = arith.mulf %156, %157 : vector<16x4xf32>
      %159 = arith.truncf %158 : vector<16x4xf32> to vector<16x4xbf16>
      %c2_133 = arith.constant 2 : index
      %c0_134 = arith.constant 0 : index
      %c0_135 = arith.constant 0 : index
      %c0_136 = arith.constant 0 : index
      %160 = vector.load %arg14[%c2_133, %c0_134, %c0_135, %c0_136] : memref<3x10x16x4xbf16, #tpu.memory_space<vmem>>, vector<1x1x16x4xbf16>
      %161 = vector.shape_cast %160 : vector<1x1x16x4xbf16> to vector<16x4xbf16>
      %162 = vector.shape_cast %159 : vector<16x4xbf16> to vector<1x1x16x4xbf16>
      tpu.vector_store %arg14[%c2_133, %c0_134, %c0_135, %c0_136], %162 {strides = array<i32>} : memref<3x10x16x4xbf16, #tpu.memory_space<vmem>>, vector<1x1x16x4xbf16>,
    } else {
    }
    %c1_i32 = arith.constant 1 : i32
    %15 = arith.cmpi eq, %arg1, %c1_i32 : i32
    %16 = arith.extui %15 : i1 to i32
    %c0_i32_12 = arith.constant 0 : i32
    %17 = arith.cmpi ne, %16, %c0_i32_12 : i32
    scf.if %17 {
      %cst_115 = arith.constant 0.000000e+00 : bf16
      %127 = vector.broadcast %cst_115 : bf16 to vector<16x4xbf16>
      %c0_116 = arith.constant 0 : index
      %c9 = arith.constant 9 : index
      %c0_117 = arith.constant 0 : index
      %c0_118 = arith.constant 0 : index
      %128 = vector.load %arg14[%c0_116, %c9, %c0_117, %c0_118] : memref<3x10x16x4xbf16, #tpu.memory_space<vmem>>, vector<1x1x16x4xbf16>
      %129 = vector.shape_cast %128 : vector<1x1x16x4xbf16> to vector<16x4xbf16>
      %130 = vector.shape_cast %127 : vector<16x4xbf16> to vector<1x1x16x4xbf16>
      tpu.vector_store %arg14[%c0_116, %c9, %c0_117, %c0_118], %130 {strides = array<i32>} : memref<3x10x16x4xbf16, #tpu.memory_space<vmem>>, vector<1x1x16x4xbf16>,
      %c1_119 = arith.constant 1 : index
      %c9_120 = arith.constant 9 : index
      %c0_121 = arith.constant 0 : index
      %c0_122 = arith.constant 0 : index
      %131 = vector.load %arg14[%c1_119, %c9_120, %c0_121, %c0_122] : memref<3x10x16x4xbf16, #tpu.memory_space<vmem>>, vector<1x1x16x4xbf16>
      %132 = vector.shape_cast %131 : vector<1x1x16x4xbf16> to vector<16x4xbf16>
      %133 = vector.shape_cast %127 : vector<16x4xbf16> to vector<1x1x16x4xbf16>
      tpu.vector_store %arg14[%c1_119, %c9_120, %c0_121, %c0_122], %133 {strides = array<i32>} : memref<3x10x16x4xbf16, #tpu.memory_space<vmem>>, vector<1x1x16x4xbf16>,
      %c2_123 = arith.constant 2 : index
      %c9_124 = arith.constant 9 : index
      %c0_125 = arith.constant 0 : index
      %c0_126 = arith.constant 0 : index
      %134 = vector.load %arg14[%c2_123, %c9_124, %c0_125, %c0_126] : memref<3x10x16x4xbf16, #tpu.memory_space<vmem>>, vector<1x1x16x4xbf16>
      %135 = vector.shape_cast %134 : vector<1x1x16x4xbf16> to vector<16x4xbf16>
      %136 = vector.shape_cast %127 : vector<16x4xbf16> to vector<1x1x16x4xbf16>
      tpu.vector_store %arg14[%c2_123, %c9_124, %c0_125, %c0_126], %136 {strides = array<i32>} : memref<3x10x16x4xbf16, #tpu.memory_space<vmem>>, vector<1x1x16x4xbf16>,
    } else {
    }
    %c1_i32_13 = arith.constant 1 : i32
    %18 = arith.cmpi slt, %arg1, %c1_i32_13 : i32
    %19 = arith.extui %18 : i1 to i32
    %c0_i32_14 = arith.constant 0 : i32
    %20 = arith.cmpi ne, %19, %c0_i32_14 : i32
    scf.if %20 {
      %c8_i32_115 = arith.constant 8 : i32
      %127 = arith.addi %1, %c8_i32_115 : i32
      %c0_116 = arith.constant 0 : index
      %128 = arith.index_cast %127 : i32 to index
      %c0_117 = arith.constant 0 : index
      %c0_118 = arith.constant 0 : index
      %129 = vector.load %arg2[%c0_116, %128, %c0_117, %c0_118] : memref<1x16x16x4xf32, #tpu.memory_space<vmem>>, vector<1x1x16x4xf32>
      %130 = vector.shape_cast %129 : vector<1x1x16x4xf32> to vector<1x16x4xf32>
      %131 = vector.shape_cast %130 : vector<1x16x4xf32> to vector<16x4xf32>
      %132 = vector.broadcast %2 : vector<1x4xf32> to vector<16x4xf32>
      %133 = arith.mulf %131, %132 : vector<16x4xf32>
      %134 = vector.broadcast %3 : vector<1x4xf32> to vector<16x4xf32>
      %135 = arith.addf %133, %134 : vector<16x4xf32>
      %cst_119 = arith.constant 0.000000e+00 : f32
      %136 = vector.broadcast %cst_119 : f32 to vector<16x4xf32>
      %137 = arith.maximumf %135, %136 : vector<16x4xf32>
      %138 = arith.truncf %137 : vector<16x4xf32> to vector<16x4xbf16>
      %c0_120 = arith.constant 0 : index
      %c0_121 = arith.constant 0 : index
      %139 = vector.load %arg7[%c0_120, %c0_121] : memref<4x4xbf16, #tpu.memory_space<vmem>>, vector<4x4xbf16>
      %cst_122 = arith.constant dense<0.000000e+00> : vector<16x4xf32>
      %140 = tpu.matmul %138, %139, %cst_122 {dimension_numbers = #tpu.dot_dimension_numbers<[1], [0], [0], [1], [0, 0, 1, 1], [], []>} : vector<16x4xbf16>, vector<4x4xbf16>, vector<16x4xf32> -> vector<16x4xf32>
      %141 = vector.broadcast %4 : vector<1x4xf32> to vector<16x4xf32>
      %142 = arith.addf %140, %141 : vector<16x4xf32>
      %cst_123 = arith.constant 0.000000e+00 : f32
      %143 = vector.broadcast %cst_123 : f32 to vector<16x4xf32>
      %144 = arith.maximumf %142, %143 : vector<16x4xf32>
      %c1_i32_124 = arith.constant 1 : i32
      %145 = tpu.dynamic_rotate %144 by %c1_i32_124 dim 0 : vector<16x4xf32>, i32 -> vector<16x4xf32>
      %146 = vector.broadcast %7 : vector<16x1xf32> to vector<16x4xf32>
      %147 = arith.mulf %145, %146 : vector<16x4xf32>
      %148 = arith.truncf %147 : vector<16x4xf32> to vector<16x4xbf16>
      %c0_125 = arith.constant 0 : index
      %c9 = arith.constant 9 : index
      %c0_126 = arith.constant 0 : index
      %c0_127 = arith.constant 0 : index
      %149 = vector.load %arg14[%c0_125, %c9, %c0_126, %c0_127] : memref<3x10x16x4xbf16, #tpu.memory_space<vmem>>, vector<1x1x16x4xbf16>
      %150 = vector.shape_cast %149 : vector<1x1x16x4xbf16> to vector<16x4xbf16>
      %151 = vector.shape_cast %148 : vector<16x4xbf16> to vector<1x1x16x4xbf16>
      tpu.vector_store %arg14[%c0_125, %c9, %c0_126, %c0_127], %151 {strides = array<i32>} : memref<3x10x16x4xbf16, #tpu.memory_space<vmem>>, vector<1x1x16x4xbf16>,
      %152 = arith.truncf %144 : vector<16x4xf32> to vector<16x4xbf16>
      %c1_128 = arith.constant 1 : index
      %c9_129 = arith.constant 9 : index
      %c0_130 = arith.constant 0 : index
      %c0_131 = arith.constant 0 : index
      %153 = vector.load %arg14[%c1_128, %c9_129, %c0_130, %c0_131] : memref<3x10x16x4xbf16, #tpu.memory_space<vmem>>, vector<1x1x16x4xbf16>
      %154 = vector.shape_cast %153 : vector<1x1x16x4xbf16> to vector<16x4xbf16>
      %155 = vector.shape_cast %152 : vector<16x4xbf16> to vector<1x1x16x4xbf16>
      tpu.vector_store %arg14[%c1_128, %c9_129, %c0_130, %c0_131], %155 {strides = array<i32>} : memref<3x10x16x4xbf16, #tpu.memory_space<vmem>>, vector<1x1x16x4xbf16>,
      %c15_i32 = arith.constant 15 : i32
      %156 = tpu.dynamic_rotate %144 by %c15_i32 dim 0 : vector<16x4xf32>, i32 -> vector<16x4xf32>
      %157 = vector.broadcast %8 : vector<16x1xf32> to vector<16x4xf32>
      %158 = arith.mulf %156, %157 : vector<16x4xf32>
      %159 = arith.truncf %158 : vector<16x4xf32> to vector<16x4xbf16>
      %c2_132 = arith.constant 2 : index
      %c9_133 = arith.constant 9 : index
      %c0_134 = arith.constant 0 : index
      %c0_135 = arith.constant 0 : index
      %160 = vector.load %arg14[%c2_132, %c9_133, %c0_134, %c0_135] : memref<3x10x16x4xbf16, #tpu.memory_space<vmem>>, vector<1x1x16x4xbf16>
      %161 = vector.shape_cast %160 : vector<1x1x16x4xbf16> to vector<16x4xbf16>
      %162 = vector.shape_cast %159 : vector<16x4xbf16> to vector<1x1x16x4xbf16>
      tpu.vector_store %arg14[%c2_132, %c9_133, %c0_134, %c0_135], %162 {strides = array<i32>} : memref<3x10x16x4xbf16, #tpu.memory_space<vmem>>, vector<1x1x16x4xbf16>,
    } else {
    }
    %c0_15 = arith.constant 0 : index
    %21 = arith.index_cast %1 : i32 to index
    %c0_16 = arith.constant 0 : index
    %c0_17 = arith.constant 0 : index
    %22 = vector.load %arg2[%c0_15, %21, %c0_16, %c0_17] : memref<1x16x16x4xf32, #tpu.memory_space<vmem>>, vector<1x8x16x4xf32>
    %23 = vector.shape_cast %22 : vector<1x8x16x4xf32> to vector<8x16x4xf32>
    %24 = vector.shape_cast %23 : vector<8x16x4xf32> to vector<128x4xf32>
    %25 = vector.broadcast %2 : vector<1x4xf32> to vector<128x4xf32>
    %26 = arith.mulf %24, %25 : vector<128x4xf32>
    %27 = vector.broadcast %3 : vector<1x4xf32> to vector<128x4xf32>
    %28 = arith.addf %26, %27 : vector<128x4xf32>
    %cst = arith.constant 0.000000e+00 : f32
    %29 = vector.broadcast %cst : f32 to vector<128x4xf32>
    %30 = arith.maximumf %28, %29 : vector<128x4xf32>
    %31 = arith.truncf %30 : vector<128x4xf32> to vector<128x4xbf16>
    %c0_18 = arith.constant 0 : index
    %c0_19 = arith.constant 0 : index
    %32 = vector.load %arg7[%c0_18, %c0_19] : memref<4x4xbf16, #tpu.memory_space<vmem>>, vector<4x4xbf16>
    %cst_20 = arith.constant dense<0.000000e+00> : vector<128x4xf32>
    %33 = tpu.matmul %31, %32, %cst_20 {dimension_numbers = #tpu.dot_dimension_numbers<[1], [0], [0], [1], [0, 0, 1, 1], [], []>} : vector<128x4xbf16>, vector<4x4xbf16>, vector<128x4xf32> -> vector<128x4xf32>
    %c0_21 = arith.constant 0 : index
    %c0_22 = arith.constant 0 : index
    %34 = vector.load %arg8[%c0_21, %c0_22] : memref<4x16xbf16, #tpu.memory_space<vmem>>, vector<4x16xbf16>
    %cst_23 = arith.constant dense<0.000000e+00> : vector<128x16xf32>
    %35 = tpu.matmul %31, %34, %cst_23 {dimension_numbers = #tpu.dot_dimension_numbers<[1], [0], [0], [1], [0, 0, 1, 1], [], []>} : vector<128x4xbf16>, vector<4x16xbf16>, vector<128x16xf32> -> vector<128x16xf32>
    %36 = vector.broadcast %4 : vector<1x4xf32> to vector<128x4xf32>
    %37 = arith.addf %33, %36 : vector<128x4xf32>
    %cst_24 = arith.constant 0.000000e+00 : f32
    %38 = vector.broadcast %cst_24 : f32 to vector<128x4xf32>
    %39 = arith.maximumf %37, %38 : vector<128x4xf32>
    %c1_i32_25 = arith.constant 1 : i32
    %40 = tpu.dynamic_rotate %39 by %c1_i32_25 dim 0 : vector<128x4xf32>, i32 -> vector<128x4xf32>
    %41 = vector.broadcast %5 : vector<128x1xf32> to vector<128x4xf32>
    %42 = arith.mulf %40, %41 : vector<128x4xf32>
    %c127_i32 = arith.constant 127 : i32
    %43 = tpu.dynamic_rotate %39 by %c127_i32 dim 0 : vector<128x4xf32>, i32 -> vector<128x4xf32>
    %44 = vector.broadcast %6 : vector<128x1xf32> to vector<128x4xf32>
    %45 = arith.mulf %43, %44 : vector<128x4xf32>
    %46 = arith.truncf %42 : vector<128x4xf32> to vector<128x4xbf16>
    %47 = arith.truncf %39 : vector<128x4xf32> to vector<128x4xbf16>
    %48 = arith.truncf %45 : vector<128x4xf32> to vector<128x4xbf16>
    %49 = vector.shape_cast %46 : vector<128x4xbf16> to vector<8x16x4xbf16>
    %c0_26 = arith.constant 0 : index
    %c1 = arith.constant 1 : index
    %c0_27 = arith.constant 0 : index
    %c0_28 = arith.constant 0 : index
    %50 = vector.load %arg14[%c0_26, %c1, %c0_27, %c0_28] : memref<3x10x16x4xbf16, #tpu.memory_space<vmem>>, vector<1x8x16x4xbf16>
    %51 = vector.shape_cast %50 : vector<1x8x16x4xbf16> to vector<8x16x4xbf16>
    %52 = vector.shape_cast %49 : vector<8x16x4xbf16> to vector<1x8x16x4xbf16>
    tpu.vector_store %arg14[%c0_26, %c1, %c0_27, %c0_28], %52 {strides = array<i32>} : memref<3x10x16x4xbf16, #tpu.memory_space<vmem>>, vector<1x8x16x4xbf16>,
    %53 = vector.shape_cast %47 : vector<128x4xbf16> to vector<8x16x4xbf16>
    %c1_29 = arith.constant 1 : index
    %c1_30 = arith.constant 1 : index
    %c0_31 = arith.constant 0 : index
    %c0_32 = arith.constant 0 : index
    %54 = vector.load %arg14[%c1_29, %c1_30, %c0_31, %c0_32] : memref<3x10x16x4xbf16, #tpu.memory_space<vmem>>, vector<1x8x16x4xbf16>
    %55 = vector.shape_cast %54 : vector<1x8x16x4xbf16> to vector<8x16x4xbf16>
    %56 = vector.shape_cast %53 : vector<8x16x4xbf16> to vector<1x8x16x4xbf16>
    tpu.vector_store %arg14[%c1_29, %c1_30, %c0_31, %c0_32], %56 {strides = array<i32>} : memref<3x10x16x4xbf16, #tpu.memory_space<vmem>>, vector<1x8x16x4xbf16>,
    %57 = vector.shape_cast %48 : vector<128x4xbf16> to vector<8x16x4xbf16>
    %c2 = arith.constant 2 : index
    %c1_33 = arith.constant 1 : index
    %c0_34 = arith.constant 0 : index
    %c0_35 = arith.constant 0 : index
    %58 = vector.load %arg14[%c2, %c1_33, %c0_34, %c0_35] : memref<3x10x16x4xbf16, #tpu.memory_space<vmem>>, vector<1x8x16x4xbf16>
    %59 = vector.shape_cast %58 : vector<1x8x16x4xbf16> to vector<8x16x4xbf16>
    %60 = vector.shape_cast %57 : vector<8x16x4xbf16> to vector<1x8x16x4xbf16>
    tpu.vector_store %arg14[%c2, %c1_33, %c0_34, %c0_35], %60 {strides = array<i32>} : memref<3x10x16x4xbf16, #tpu.memory_space<vmem>>, vector<1x8x16x4xbf16>,
    %c1_36 = arith.constant 1 : index
    %c0_37 = arith.constant 0 : index
    %c0_38 = arith.constant 0 : index
    %c0_39 = arith.constant 0 : index
    %61 = vector.load %arg10[%c1_36, %c0_37, %c0_38, %c0_39] : memref<3x3x4x4xbf16, #tpu.memory_space<vmem>>, vector<1x1x4x4xbf16>
    %62 = vector.shape_cast %61 : vector<1x1x4x4xbf16> to vector<4x4xbf16>
    %cst_40 = arith.constant dense<0.000000e+00> : vector<128x4xf32>
    %63 = tpu.matmul %46, %62, %cst_40 {dimension_numbers = #tpu.dot_dimension_numbers<[1], [0], [0], [1], [0, 0, 1, 1], [], []>} : vector<128x4xbf16>, vector<4x4xbf16>, vector<128x4xf32> -> vector<128x4xf32>
    %c1_41 = arith.constant 1 : index
    %c1_42 = arith.constant 1 : index
    %c0_43 = arith.constant 0 : index
    %c0_44 = arith.constant 0 : index
    %64 = vector.load %arg10[%c1_41, %c1_42, %c0_43, %c0_44] : memref<3x3x4x4xbf16, #tpu.memory_space<vmem>>, vector<1x1x4x4xbf16>
    %65 = vector.shape_cast %64 : vector<1x1x4x4xbf16> to vector<4x4xbf16>
    %cst_45 = arith.constant dense<0.000000e+00> : vector<128x4xf32>
    %66 = tpu.matmul %47, %65, %cst_45 {dimension_numbers = #tpu.dot_dimension_numbers<[1], [0], [0], [1], [0, 0, 1, 1], [], []>} : vector<128x4xbf16>, vector<4x4xbf16>, vector<128x4xf32> -> vector<128x4xf32>
    %67 = arith.addf %63, %66 : vector<128x4xf32>
    %c1_46 = arith.constant 1 : index
    %c2_47 = arith.constant 2 : index
    %c0_48 = arith.constant 0 : index
    %c0_49 = arith.constant 0 : index
    %68 = vector.load %arg10[%c1_46, %c2_47, %c0_48, %c0_49] : memref<3x3x4x4xbf16, #tpu.memory_space<vmem>>, vector<1x1x4x4xbf16>
    %69 = vector.shape_cast %68 : vector<1x1x4x4xbf16> to vector<4x4xbf16>
    %cst_50 = arith.constant dense<0.000000e+00> : vector<128x4xf32>
    %70 = tpu.matmul %48, %69, %cst_50 {dimension_numbers = #tpu.dot_dimension_numbers<[1], [0], [0], [1], [0, 0, 1, 1], [], []>} : vector<128x4xbf16>, vector<4x4xbf16>, vector<128x4xf32> -> vector<128x4xf32>
    %71 = arith.addf %67, %70 : vector<128x4xf32>
    %c0_51 = arith.constant 0 : index
    %c0_52 = arith.constant 0 : index
    %c0_53 = arith.constant 0 : index
    %c0_54 = arith.constant 0 : index
    %72 = vector.load %arg14[%c0_51, %c0_52, %c0_53, %c0_54] : memref<3x10x16x4xbf16, #tpu.memory_space<vmem>>, vector<1x8x16x4xbf16>
    %73 = vector.shape_cast %72 : vector<1x8x16x4xbf16> to vector<8x16x4xbf16>
    %74 = vector.shape_cast %73 : vector<8x16x4xbf16> to vector<128x4xbf16>
    %c0_55 = arith.constant 0 : index
    %c0_56 = arith.constant 0 : index
    %c0_57 = arith.constant 0 : index
    %c0_58 = arith.constant 0 : index
    %75 = vector.load %arg10[%c0_55, %c0_56, %c0_57, %c0_58] : memref<3x3x4x4xbf16, #tpu.memory_space<vmem>>, vector<1x1x4x4xbf16>
    %76 = vector.shape_cast %75 : vector<1x1x4x4xbf16> to vector<4x4xbf16>
    %cst_59 = arith.constant dense<0.000000e+00> : vector<128x4xf32>
    %77 = tpu.matmul %74, %76, %cst_59 {dimension_numbers = #tpu.dot_dimension_numbers<[1], [0], [0], [1], [0, 0, 1, 1], [], []>} : vector<128x4xbf16>, vector<4x4xbf16>, vector<128x4xf32> -> vector<128x4xf32>
    %78 = arith.addf %71, %77 : vector<128x4xf32>
    %c1_60 = arith.constant 1 : index
    %c0_61 = arith.constant 0 : index
    %c0_62 = arith.constant 0 : index
    %c0_63 = arith.constant 0 : index
    %79 = vector.load %arg14[%c1_60, %c0_61, %c0_62, %c0_63] : memref<3x10x16x4xbf16, #tpu.memory_space<vmem>>, vector<1x8x16x4xbf16>
    %80 = vector.shape_cast %79 : vector<1x8x16x4xbf16> to vector<8x16x4xbf16>
    %81 = vector.shape_cast %80 : vector<8x16x4xbf16> to vector<128x4xbf16>
    %c0_64 = arith.constant 0 : index
    %c1_65 = arith.constant 1 : index
    %c0_66 = arith.constant 0 : index
    %c0_67 = arith.constant 0 : index
    %82 = vector.load %arg10[%c0_64, %c1_65, %c0_66, %c0_67] : memref<3x3x4x4xbf16, #tpu.memory_space<vmem>>, vector<1x1x4x4xbf16>
    %83 = vector.shape_cast %82 : vector<1x1x4x4xbf16> to vector<4x4xbf16>
    %cst_68 = arith.constant dense<0.000000e+00> : vector<128x4xf32>
    %84 = tpu.matmul %81, %83, %cst_68 {dimension_numbers = #tpu.dot_dimension_numbers<[1], [0], [0], [1], [0, 0, 1, 1], [], []>} : vector<128x4xbf16>, vector<4x4xbf16>, vector<128x4xf32> -> vector<128x4xf32>
    %85 = arith.addf %78, %84 : vector<128x4xf32>
    %c2_69 = arith.constant 2 : index
    %c0_70 = arith.constant 0 : index
    %c0_71 = arith.constant 0 : index
    %c0_72 = arith.constant 0 : index
    %86 = vector.load %arg14[%c2_69, %c0_70, %c0_71, %c0_72] : memref<3x10x16x4xbf16, #tpu.memory_space<vmem>>, vector<1x8x16x4xbf16>
    %87 = vector.shape_cast %86 : vector<1x8x16x4xbf16> to vector<8x16x4xbf16>
    %88 = vector.shape_cast %87 : vector<8x16x4xbf16> to vector<128x4xbf16>
    %c0_73 = arith.constant 0 : index
    %c2_74 = arith.constant 2 : index
    %c0_75 = arith.constant 0 : index
    %c0_76 = arith.constant 0 : index
    %89 = vector.load %arg10[%c0_73, %c2_74, %c0_75, %c0_76] : memref<3x3x4x4xbf16, #tpu.memory_space<vmem>>, vector<1x1x4x4xbf16>
    %90 = vector.shape_cast %89 : vector<1x1x4x4xbf16> to vector<4x4xbf16>
    %cst_77 = arith.constant dense<0.000000e+00> : vector<128x4xf32>
    %91 = tpu.matmul %88, %90, %cst_77 {dimension_numbers = #tpu.dot_dimension_numbers<[1], [0], [0], [1], [0, 0, 1, 1], [], []>} : vector<128x4xbf16>, vector<4x4xbf16>, vector<128x4xf32> -> vector<128x4xf32>
    %92 = arith.addf %85, %91 : vector<128x4xf32>
    %c0_78 = arith.constant 0 : index
    %c2_79 = arith.constant 2 : index
    %c0_80 = arith.constant 0 : index
    %c0_81 = arith.constant 0 : index
    %93 = vector.load %arg14[%c0_78, %c2_79, %c0_80, %c0_81] : memref<3x10x16x4xbf16, #tpu.memory_space<vmem>>, vector<1x8x16x4xbf16>
    %94 = vector.shape_cast %93 : vector<1x8x16x4xbf16> to vector<8x16x4xbf16>
    %95 = vector.shape_cast %94 : vector<8x16x4xbf16> to vector<128x4xbf16>
    %c2_82 = arith.constant 2 : index
    %c0_83 = arith.constant 0 : index
    %c0_84 = arith.constant 0 : index
    %c0_85 = arith.constant 0 : index
    %96 = vector.load %arg10[%c2_82, %c0_83, %c0_84, %c0_85] : memref<3x3x4x4xbf16, #tpu.memory_space<vmem>>, vector<1x1x4x4xbf16>
    %97 = vector.shape_cast %96 : vector<1x1x4x4xbf16> to vector<4x4xbf16>
    %cst_86 = arith.constant dense<0.000000e+00> : vector<128x4xf32>
    %98 = tpu.matmul %95, %97, %cst_86 {dimension_numbers = #tpu.dot_dimension_numbers<[1], [0], [0], [1], [0, 0, 1, 1], [], []>} : vector<128x4xbf16>, vector<4x4xbf16>, vector<128x4xf32> -> vector<128x4xf32>
    %99 = arith.addf %92, %98 : vector<128x4xf32>
    %c1_87 = arith.constant 1 : index
    %c2_88 = arith.constant 2 : index
    %c0_89 = arith.constant 0 : index
    %c0_90 = arith.constant 0 : index
    %100 = vector.load %arg14[%c1_87, %c2_88, %c0_89, %c0_90] : memref<3x10x16x4xbf16, #tpu.memory_space<vmem>>, vector<1x8x16x4xbf16>
    %101 = vector.shape_cast %100 : vector<1x8x16x4xbf16> to vector<8x16x4xbf16>
    %102 = vector.shape_cast %101 : vector<8x16x4xbf16> to vector<128x4xbf16>
    %c2_91 = arith.constant 2 : index
    %c1_92 = arith.constant 1 : index
    %c0_93 = arith.constant 0 : index
    %c0_94 = arith.constant 0 : index
    %103 = vector.load %arg10[%c2_91, %c1_92, %c0_93, %c0_94] : memref<3x3x4x4xbf16, #tpu.memory_space<vmem>>, vector<1x1x4x4xbf16>
    %104 = vector.shape_cast %103 : vector<1x1x4x4xbf16> to vector<4x4xbf16>
    %cst_95 = arith.constant dense<0.000000e+00> : vector<128x4xf32>
    %105 = tpu.matmul %102, %104, %cst_95 {dimension_numbers = #tpu.dot_dimension_numbers<[1], [0], [0], [1], [0, 0, 1, 1], [], []>} : vector<128x4xbf16>, vector<4x4xbf16>, vector<128x4xf32> -> vector<128x4xf32>
    %106 = arith.addf %99, %105 : vector<128x4xf32>
    %c2_96 = arith.constant 2 : index
    %c2_97 = arith.constant 2 : index
    %c0_98 = arith.constant 0 : index
    %c0_99 = arith.constant 0 : index
    %107 = vector.load %arg14[%c2_96, %c2_97, %c0_98, %c0_99] : memref<3x10x16x4xbf16, #tpu.memory_space<vmem>>, vector<1x8x16x4xbf16>
    %108 = vector.shape_cast %107 : vector<1x8x16x4xbf16> to vector<8x16x4xbf16>
    %109 = vector.shape_cast %108 : vector<8x16x4xbf16> to vector<128x4xbf16>
    %c2_100 = arith.constant 2 : index
    %c2_101 = arith.constant 2 : index
    %c0_102 = arith.constant 0 : index
    %c0_103 = arith.constant 0 : index
    %110 = vector.load %arg10[%c2_100, %c2_101, %c0_102, %c0_103] : memref<3x3x4x4xbf16, #tpu.memory_space<vmem>>, vector<1x1x4x4xbf16>
    %111 = vector.shape_cast %110 : vector<1x1x4x4xbf16> to vector<4x4xbf16>
    %cst_104 = arith.constant dense<0.000000e+00> : vector<128x4xf32>
    %112 = tpu.matmul %109, %111, %cst_104 {dimension_numbers = #tpu.dot_dimension_numbers<[1], [0], [0], [1], [0, 0, 1, 1], [], []>} : vector<128x4xbf16>, vector<4x4xbf16>, vector<128x4xf32> -> vector<128x4xf32>
    %113 = arith.addf %106, %112 : vector<128x4xf32>
    %c0_105 = arith.constant 0 : index
    %c0_106 = arith.constant 0 : index
    %114 = vector.load %arg11[%c0_105, %c0_106] : memref<1x4xf32, #tpu.memory_space<vmem>>, vector<1x4xf32>
    %115 = vector.broadcast %114 : vector<1x4xf32> to vector<128x4xf32>
    %116 = arith.addf %113, %115 : vector<128x4xf32>
    %cst_107 = arith.constant 0.000000e+00 : f32
    %117 = vector.broadcast %cst_107 : f32 to vector<128x4xf32>
    %118 = arith.maximumf %116, %117 : vector<128x4xf32>
    %119 = arith.truncf %118 : vector<128x4xf32> to vector<128x4xbf16>
    %c0_108 = arith.constant 0 : index
    %c0_109 = arith.constant 0 : index
    %120 = vector.load %arg12[%c0_108, %c0_109] : memref<4x16xbf16, #tpu.memory_space<vmem>>, vector<4x16xbf16>
    %cst_110 = arith.constant dense<0.000000e+00> : vector<128x16xf32>
    %121 = tpu.matmul %119, %120, %cst_110 {dimension_numbers = #tpu.dot_dimension_numbers<[1], [0], [0], [1], [0, 0, 1, 1], [], []>} : vector<128x4xbf16>, vector<4x16xbf16>, vector<128x16xf32> -> vector<128x16xf32>
    %122 = arith.addf %35, %121 : vector<128x16xf32>
    %123 = vector.shape_cast %122 : vector<128x16xf32> to vector<8x16x16xf32>
    %c0_111 = arith.constant 0 : index
    %c0_112 = arith.constant 0 : index
    %c0_113 = arith.constant 0 : index
    %c0_114 = arith.constant 0 : index
    %124 = vector.load %arg13[%c0_111, %c0_112, %c0_113, %c0_114] : memref<1x8x16x16xf32, #tpu.memory_space<vmem>>, vector<1x8x16x16xf32>
    %125 = vector.shape_cast %124 : vector<1x8x16x16xf32> to vector<8x16x16xf32>
    %126 = vector.shape_cast %123 : vector<8x16x16xf32> to vector<1x8x16x16xf32>
    tpu.vector_store %arg13[%c0_111, %c0_112, %c0_113, %c0_114], %126 {strides = array<i32>} : memref<1x8x16x16xf32, #tpu.memory_space<vmem>>, vector<1x8x16x16xf32>,
    return
  }
  func.func @transform_0(%arg0: i32, %arg1: i32) -> (i32, i32, i32, i32) {
    %c0_i32 = arith.constant 0 : i32
    %c0_i32_0 = arith.constant 0 : i32
    %c0_i32_1 = arith.constant 0 : i32
    %c0_i32_2 = arith.constant 0 : i32
    return %arg0, %c0_i32, %c0_i32_0, %c0_i32_1 : i32, i32, i32, i32
  }
  func.func @transform_1(%arg0: i32, %arg1: i32) -> (i32, i32) {
    %c0_i32 = arith.constant 0 : i32
    %c0_i32_0 = arith.constant 0 : i32
    %c0_i32_1 = arith.constant 0 : i32
    return %c0_i32, %c0_i32_0 : i32, i32
  }
  func.func @transform_2(%arg0: i32, %arg1: i32) -> (i32, i32) {
    %c0_i32 = arith.constant 0 : i32
    %c0_i32_0 = arith.constant 0 : i32
    %c0_i32_1 = arith.constant 0 : i32
    return %c0_i32, %c0_i32_0 : i32, i32
  }
  func.func @transform_3(%arg0: i32, %arg1: i32) -> (i32, i32) {
    %c0_i32 = arith.constant 0 : i32
    %c0_i32_0 = arith.constant 0 : i32
    %c0_i32_1 = arith.constant 0 : i32
    return %c0_i32, %c0_i32_0 : i32, i32
  }
  func.func @transform_4(%arg0: i32, %arg1: i32) -> (i32, i32) {
    %c0_i32 = arith.constant 0 : i32
    %c0_i32_0 = arith.constant 0 : i32
    %c0_i32_1 = arith.constant 0 : i32
    return %c0_i32, %c0_i32_0 : i32, i32
  }
  func.func @transform_5(%arg0: i32, %arg1: i32) -> (i32, i32) {
    %c0_i32 = arith.constant 0 : i32
    %c0_i32_0 = arith.constant 0 : i32
    %c0_i32_1 = arith.constant 0 : i32
    return %c0_i32, %c0_i32_0 : i32, i32
  }
  func.func @transform_6(%arg0: i32, %arg1: i32) -> (i32, i32) {
    %c0_i32 = arith.constant 0 : i32
    %c0_i32_0 = arith.constant 0 : i32
    %c0_i32_1 = arith.constant 0 : i32
    return %c0_i32, %c0_i32_0 : i32, i32
  }
  func.func @transform_7(%arg0: i32, %arg1: i32) -> (i32, i32) {
    %c0_i32 = arith.constant 0 : i32
    %c0_i32_0 = arith.constant 0 : i32
    %c0_i32_1 = arith.constant 0 : i32
    return %c0_i32, %c0_i32_0 : i32, i32
  }
  func.func @transform_8(%arg0: i32, %arg1: i32) -> (i32, i32, i32, i32) {
    %c0_i32 = arith.constant 0 : i32
    %c0_i32_0 = arith.constant 0 : i32
    %c0_i32_1 = arith.constant 0 : i32
    %c0_i32_2 = arith.constant 0 : i32
    %c0_i32_3 = arith.constant 0 : i32
    return %c0_i32, %c0_i32_0, %c0_i32_1, %c0_i32_2 : i32, i32, i32, i32
  }
  func.func @transform_9(%arg0: i32, %arg1: i32) -> (i32, i32) {
    %c0_i32 = arith.constant 0 : i32
    %c0_i32_0 = arith.constant 0 : i32
    %c0_i32_1 = arith.constant 0 : i32
    return %c0_i32, %c0_i32_0 : i32, i32
  }
  func.func @transform_10(%arg0: i32, %arg1: i32) -> (i32, i32) {
    %c0_i32 = arith.constant 0 : i32
    %c0_i32_0 = arith.constant 0 : i32
    %c0_i32_1 = arith.constant 0 : i32
    return %c0_i32, %c0_i32_0 : i32, i32
  }
  func.func @transform_11(%arg0: i32, %arg1: i32) -> (i32, i32, i32, i32) {
    %c0_i32 = arith.constant 0 : i32
    %c0_i32_0 = arith.constant 0 : i32
    %c0_i32_1 = arith.constant 0 : i32
    return %arg0, %arg1, %c0_i32, %c0_i32_0 : i32, i32, i32, i32
  }
}

</mosaic_0001>

<bundles_post_ra>
// kernel: tpu_custom_call.1
= control target key start
LH: loop header
LB: loop body
LE: loop exit
PB: predicated region body
PF: predicated region fallthrough
CT: control target
= control target key end

     0   :  { %s5900_s0 = inlined_call_operand.vmem [shape: f32[2,16,16,4], index: 0, kind: input, shape index: {}]   ;;  %s5901_s1 = inlined_call_operand.vmem [shape: f32[128,1], index: 1, kind: input, shape index: {}]   ;;  %s5902_s2 = inlined_call_operand.vmem [shape: f32[128,1], index: 2, kind: input, shape index: {}]   ;;  %s5903_s3 = inlined_call_operand.vmem [shape: f32[1,4], index: 3, kind: input, shape index: {}]   ;;  %s5904_s4 = inlined_call_operand.vmem [shape: f32[1,4], index: 4, kind: input, shape index: {}]   ;;  %s5905_s5 = inlined_call_operand.vmem [shape: bf16[4,4], index: 5, kind: input, shape index: {}]   ;;  %s5906_s6 = inlined_call_operand.vmem [shape: bf16[4,16], index: 6, kind: input, shape index: {}]   ;;  %s5907_s7 = inlined_call_operand.vmem [shape: f32[1,4], index: 7, kind: input, shape index: {}]   ;;  %s5908_s8 = inlined_call_operand.vmem [shape: bf16[3,3,4,4], index: 8, kind: input, shape index: {}]   ;;  %s5909_s9 = inlined_call_operand.vmem [shape: f32[1,4], index: 9, kind: input, shape index: {}]   ;;  %s5910_s10 = inlined_call_operand.vmem [shape: bf16[4,16], index: 10, kind: input, shape index: {}]   ;;  %s5911_s11 = inlined_call_operand.hbm [shape: f32[2,16,16,16], index: 11, kind: output, shape index: {}]  }
   0x1   :  { %5922 = sst [smem:[#allocation36_spill]] %s5903_s3 }
   0x2   :  { %5923 = sst [smem:[#allocation37_spill]] %s5904_s4 }
   0x3   :  { %16 = vsyncpa [#allocation4], 0 }
   0x4   :  { %18 = vsyncpa [#allocation4 + $0x1], 0  ;;  %s4451_s17 = smov 0   ;;  %s4453_s18 = smov 0  }
   0x5   :  { %s4455_s19 = smov 0   ;;  %s4457_s20 = smov 0  }
   0x6   :  { %s4459_s21 = smov 0   ;;  %s4461_s22 = smov 0  }
   0x7   :  { %s4463_s23 = smov 0   ;;  %s4465_s24 = smov 0  }
   0x8 LB: > { %5924 = sst [smem:[#allocation6_spill]] %s4369_s22  ;;  %s3491_s25 = sadd.s32 4294967295, %s4377_s24   ;;  %s4377_s24 = sphi %s4465_s24, %s24_s24   ;;  %s4373_s23 = sphi %s4463_s23, %s6016_s23   ;;  %s4369_s22 = sphi %s4461_s22, %s6015_s22   ;;  %s4365_s21 = sphi %s4459_s21, %s6014_s21   ;;  %s4361_s20 = sphi %s4457_s20, %s6013_s20   ;;  %s4357_s19 = sphi %s4455_s19, %s6019_s19   ;;  %s4353_s18 = sphi %s4453_s18, %s6018_s18   ;;  %s4349_s17 = sphi %s4451_s17, %s6017_s17  }
   0x9   : > { %5925 = sst [smem:[#allocation7_spill]] %s4373_s23  ;;  %s3492_s26 = sadd.s32 4294967294, %s4377_s24  }
   0xa   : > { %s33_s27 = sadd.s32 1, %s4369_s22  ;;  %s36_s28 = sadd.s32 1, %s4373_s23 }
   0xb   : > { %p34_p0 = scmp.ge.s32.totalorder %s33_s27, 2  ;;  %p291_p1 = scmp.ne.s32.totalorder %s4357_s19, %s4353_s18 }
   0xc   : > { %p292_p2 = scmp.eq.s32.totalorder %s3491_s25, 3  ;;  %p297_p5 = scmp.ne.s32.totalorder %s4353_s18, %s4349_s17 }
   0xd   : > { %s6021_s27 = smov (%p34_p0, %s33_s27), 0  ;;  %s6023_s28 = smov (!%p34_p0, %s36_s28), %s4373_s23 }
   0xe   : > { %5926 = sst [smem:[#allocation8_spill]] %s6021_s27  ;;  %s277_s29 = ssub.s32 %s4369_s22, %s6021_s27 }
   0xf   : > { %p4502_p3 = por %p292_p2, %p291_p1  ;;  %p38_p4 = scmp.ge.s32.totalorder %s6023_s28, 2 }
  0x10   : > { %p298_p6 = scmp.eq.s32.totalorder %s3492_s26, 3  ;;  %p3495_p7 = scmp.ge.s32.totalorder %s4377_s24, 1 }
  0x11   : > { %s6025_s28 = smov (%p38_p4, %s6023_s28), 0  ;;  %p354_p9 = scmp.lt.s32.totalorder %s4377_s24, 5 }
  0x12   : > { %5928 = sst [smem:[#allocation9_spill]] %s6025_s28  ;;  %p4511_p8 = por %p298_p6, %p297_p5 }
  0x13   : > { %s276_s13 = ssub.s32 %s4373_s23, %s6025_s28  ;;  %s281_s14 = sadd.s32 1, %s4357_s19 }
  0x14   : > { %s278_s15 = sor.u32 %s277_s29, %s276_s13  ;;  %p355_p10 = pnand %p3495_p7, %p354_p9 }
  0x15   : > { %p279_p11 = scmp.eq.s32.totalorder %s278_s15, 0 }
  0x16   : > { %358 = sbr.rel (%p355_p10) target bundleno = 1326 (0x52e), region = 64 }
  0x17   : > { %s4520_s16 = scalar_select %p279_p11, %s4357_s19, %s281_s14  }
  0x19   : > { %5930 = sst [smem:[#allocation10_spill]] %s4520_s16 }
  0x1b   : > { %s5916_s25 = sand.u32 1, %s4353_s18   ;;  %p394_p12 = scmp.lt.s32.totalorder %s4365_s21, 1  ;;  %v4542_v2 = vld [vmem:[%s5907_s7] sm:$0x1]  ;;  %v4552_v4 = vld [vmem:[%s5901_s1 + $0x8] sm:$0xff]  ;;  %v4557_v5 = vld [vmem:[%s5901_s1 + $0x10] sm:$0xff] }
  0x1c   : > { %s5931_s3 = sld [smem:[#allocation36_spill]]  ;;  %s4536_s29 = sshll.u32 %s5916_s25, 7  ;;  %v4547_v3 = vld [vmem:[%s5901_s1] sm:$0xff]  ;;  %v4562_v6 = vld [vmem:[%s5901_s1 + $0x18] sm:$0xff]  ;;  %v4573_v8 = vld [vmem:[%s5901_s1 + $0x28] sm:$0xff] }
  0x1d   : > { %s5932_s4 = sld [smem:[#allocation37_spill]]  ;;  %v4567_v7 = vld [vmem:[%s5901_s1 + $0x20] sm:$0xff]  ;;  %v4578_v9 = vld [vmem:[%s5901_s1 + $0x30] sm:$0xff]  ;;  %v4583_v10 = vld [vmem:[%s5901_s1 + $0x38] sm:$0xff]  ;;  %s4711_s28 = scalar_lea.vmem [#allocation3], %s4536_s29 }
  0x1e   : > { %s395_s22 = scalar_select %p394_p12, %s4365_s21, 1  ;;  %v4588_v11 = vld [vmem:[%s5901_s1 + $0x40] sm:$0xff]  ;;  %v4593_v12 = vld [vmem:[%s5901_s1 + $0x48] sm:$0xff]  ;;  %v4598_v13 = vld [vmem:[%s5901_s1 + $0x50] sm:$0xff] }
  0x1f   : > { %v4603_v14 = vld [vmem:[%s5901_s1 + $0x58] sm:$0xff]  ;;  %v4608_v15 = vld [vmem:[%s5901_s1 + $0x60] sm:$0xff]  ;;  %v4613_v16 = vld [vmem:[%s5901_s1 + $0x68] sm:$0xff]  ;;  %p3500_p13 = scmp.ne.s32.totalorder %s4361_s20, 0 }
  0x20   : > { %s3733_s26 = sshll.u32 %s395_s22, 8  ;;  %v4623_v17 = vld [vmem:[%s5901_s1 + $0x70] sm:$0xff]  ;;  %v4628_v18 = vld [vmem:[%s5901_s1 + $0x78] sm:$0xff]  ;;  %v4633_v19 = vld [vmem:[%s5902_s2] sm:$0xff] }
  0x21   : > { %s4618_s27 = scalar_lea.vmem %s5900_s0, %s3733_s26  ;;  %v4638_v20 = vld [vmem:[%s5902_s2 + $0x8] sm:$0xff]  ;;  %v4643_v21 = vld [vmem:[%s5902_s2 + $0x10] sm:$0xff]  ;;  %v4648_v22 = vld [vmem:[%s5902_s2 + $0x18] sm:$0xff] }
  0x22   : > { %v4527_v0 = vld [vmem:[%s5931_s3] sm:$0x1]  ;;  %v4658_v24 = vld [vmem:[%s5902_s2 + $0x28] sm:$0xff]  ;;  %v4663_v25 = vld [vmem:[%s5902_s2 + $0x30] sm:$0xff]  ;;  %440 = sbr.rel (%p3500_p13) target bundleno = 43 (0x2b), region = 68 }
  0x23   : > { %v4532_v1 = vld [vmem:[%s5932_s4] sm:$0x1]  ;;  %v4668_v26 = vld [vmem:[%s5902_s2 + $0x38] sm:$0xff]  ;;  %v4678_v28 = vld [vmem:[%s5902_s2 + $0x48] sm:$0xff] }
  0x24   : > { %v4653_v23 = vld [vmem:[%s5902_s2 + $0x20] sm:$0xff]  ;;  %v4683_v29 = vld [vmem:[%s5902_s2 + $0x50] sm:$0xff]  ;;  %v4688_v30 = vld [vmem:[%s5902_s2 + $0x58] sm:$0xff] }
  0x25   : > { %v4673_v27 = vld [vmem:[%s5902_s2 + $0x40] sm:$0xff]  ;;  %v4698_v32 = vld [vmem:[%s5902_s2 + $0x68] sm:$0xff]  ;;  %v4703_v33 = vld [vmem:[%s5902_s2 + $0x70] sm:$0xff] }
  0x26   : > { %v4693_v31 = vld [vmem:[%s5902_s2 + $0x60] sm:$0xff]  ;;  %v4708_v34 = vld [vmem:[%s5902_s2 + $0x78] sm:$0xff] }
  0x27   : > { %vm441_vm0 = vcmask 27648   ;;  %v4379_v35 = vmov 0  }
  0x28   : > { %442 = vst.msk [vmem:[#allocation2] sm:$0xf] %vm441_vm0, %v4379_v35  ;;  %443 = vst.msk [vmem:[#allocation2 + $0x4] sm:$0xf] %vm441_vm0, %v4379_v35 }
  0x29   : > { %445 = vst.msk [vmem:[#allocation2 + $0x50] sm:$0xf] %vm441_vm0, %v4379_v35  ;;  %446 = vst.msk [vmem:[#allocation2 + $0x54] sm:$0xf] %vm441_vm0, %v4379_v35 }
  0x2a   : > { %448 = vst.msk [vmem:[#allocation2 + $0xa0] sm:$0xf] %vm441_vm0, %v4379_v35  ;;  %449 = vst.msk [vmem:[#allocation2 + $0xa4] sm:$0xf] %vm441_vm0, %v4379_v35 }
  0x2b PF: > { %p3501_p0 = scmp.le.s32.totalorder %s4361_s20, 0 }
  0x2c   : > { %s5933_s29 = sshll.u32 (!%p3501_p0), %s4361_s20, 3 }
  0x2d   : > { %453 = sbr.rel (%p3501_p0) target bundleno = 276 (0x114), region = 72  ;;  %s3502_s14 = sadd.s32 (!%p3501_p0), 4294967295, %s5933_s29 }
  0x2e   : > { %s3503_s3 = sshll.u32 (!%p3501_p0), %s3502_s14, 4 }
  0x2f   : > { %s456_s26 = scalar_lea.vmem (!%p3501_p0), %s4618_s27, %s3503_s3 }
  0x32   : > { %v478_v36 = vld [vmem:[%s5905_s5] sm:$0x3]  ;;  %vm489_vm1 = vcmask 1041408   ;;  %v460_v37 = vlaneseq  ;;  %v4380_v38 = vmov 0.0   ;;  %vm4381_vm2 = vmmov 0   ;;  %v458_v44 = vld [vmem:[%s456_s26 + $0x8] sm:$0xff] }
  0x33   : > { %3909 = vmatprep.subr.bf16.mxu0 %v4380_v38  ;;  %v491_v39 = vsel %vm489_vm1, %v478_v36, 0  ;;  %3911 = vmatprep.mubr.msk.bf16.mxu0 %vm4381_vm2, %v4380_v38  ;;  %v4382_v41 = vmov 0   ;;  %v457_v43 = vld [vmem:[%s456_s26] sm:$0xff]  ;;  %vm485_vm3 = vcmask 31744   ;;  %vm563_vm4 = vcmask 27648  }
  0x34   : > { %3910 = vmatpush3.bf16.msra.mxu0 %v491_v39  ;;  %v461_v40 = vshrl.u32 %v460_v37, 7  ;;  %4232 = vset.pattern.permute.xlu1 %v4382_v41 }
  0x35   : > { %4231 = vset.pattern.permute.xlu0 %v4382_v41  ;;  %584 = vperm.xlu1 %4232, %v4633_v19  }
  0x36   : > { %v462_v42 = vsub.s32 0, %v461_v40  ;;  %545 = vperm.xlu0 %4231, %v4547_v3   ;;  %vm579_vm5 = vcmp.lt.s32.totalorder %v461_v40, 7  ;;  %vm540_vm6 = vcmp.lt.s32.totalorder %v461_v40, 1 }
  0x38   : > { %v463_v45 = vrot.slane %v4527_v0, %v462_v42  ;;  %v471_v46 = vrot.slane %v4532_v1, %v462_v42  ;;  %v483_v54 = vrot.slane %v4542_v2, %v462_v42 }
  0x39   : > { %589 = vperm.xlu1 %4232, %v4638_v20  }
  0x3a   : > { %v465_v47 = vmul.f32 %v463_v45, %v457_v43  ;;  %v466_v48 = vmul.f32 %v463_v45, %v458_v44  ;;  %550 = vperm.xlu0 %4231, %v4552_v4  }
  0x3c   : > { %v473_v49 = vadd.f32 %v471_v46, %v465_v47  ;;  %v474_v50 = vadd.f32 %v471_v46, %v466_v48 }
  0x3e   : > { %v475_v51 = vmax.f32 %v473_v49, 0.0  ;;  %v476_v52 = vmax.f32 %v474_v50, 0.0 }
  0x40   : > { %v477_v53 = vpack.c.bf16 %v476_v52, %v475_v51 }
  0x42   : > { %3912 = vmatmul.mubr.msk.bf16.vlgmr.msra.gmra.mxu0 %vm485_vm3, %v477_v53 }
  0xb0   : > { %v585_v61 = vpop.permute.xlu1 %584 }
  0xb1   : > { %v546_v62 = vpop.permute.xlu0 %545 }
  0xb4   : > { %v590_v43 = vpop.permute.xlu1 %589 }
  0xb5   : > { %v551_v46 = vpop.permute.xlu0 %550 }
 0x102   : > { %v527_v55 = vpop.f32.mrf.mxu0 }
 0x103   : > { %v528_v56 = vadd.f32 %v527_v55, %v483_v54 }
 0x104   : > { %v3913_v57 = vpop.f32.mrf.mxu0 }
 0x105   : > { %v534_v58 = vmax.f32 %v528_v56, 0.0 }
 0x106   : > { %v530_v59 = vpop.f32.mrf.mxu0 }
 0x107   : > { %v3736_v60 = vpack.c.bf16 %v534_v58, %v534_v58  ;;  %v531_v63 = vadd.f32 %v530_v59, %v483_v54  ;;  %v536_v37 = vrot.slane %v534_v58, 7  ;;  %v577_v38 = vrot.slane %v534_v58, 1 }
 0x108   : > { %v3914_v35 = vpop.f32.mrf.mxu0 }
 0x109   : > { %575 = vst.msk [vmem:[#allocation2 + $0x50] sm:$0xf] %vm563_vm4, %v3736_v60  ;;  %v535_v36 = vmax.f32 %v531_v63, 0.0 }
 0x10b   : > { %v537_v39 = vrot.slane %v535_v36, 7  ;;  %v3737_v41 = vpack.c.bf16 %v535_v36, %v535_v36  ;;  %v578_v42 = vrot.slane %v535_v36, 1 }
 0x10d   : > { %576 = vst.msk [vmem:[#allocation2 + $0x54] sm:$0xf] %vm563_vm4, %v3737_v41  ;;  %v580_v44 = vsel %vm579_vm5, %v577_v38, %v578_v42  ;;  %v581_v45 = vsel %vm579_vm5, %v578_v42, %v577_v38  ;;  %v541_v47 = vsel %vm540_vm6, %v536_v37, %v537_v39  ;;  %v542_v48 = vsel %vm540_vm6, %v537_v39, %v536_v37 }
 0x10e   : > { %v592_v49 = vmul.f32 %v585_v61, %v580_v44  ;;  %v593_v50 = vmul.f32 %v590_v43, %v581_v45  ;;  %v553_v51 = vmul.f32 %v546_v62, %v542_v48  ;;  %v554_v52 = vmul.f32 %v551_v46, %v541_v47 }
 0x110   : > { %v3738_v53 = vpack.c.bf16 %v592_v49, %v592_v49  ;;  %v3739_v54 = vpack.c.bf16 %v593_v50, %v593_v50  ;;  %v3734_v55 = vpack.c.bf16 %v553_v51, %v553_v51  ;;  %v3735_v40 = vpack.c.bf16 %v554_v52, %v554_v52 }
 0x112   : > { %603 = vst.msk [vmem:[#allocation2 + $0xa0] sm:$0xf] %vm563_vm4, %v3738_v53  ;;  %604 = vst.msk [vmem:[#allocation2 + $0xa4] sm:$0xf] %vm563_vm4, %v3739_v54 }
 0x113   : > { %564 = vst.msk [vmem:[#allocation2] sm:$0xf] %vm563_vm4, %v3734_v55  ;;  %565 = vst.msk [vmem:[#allocation2 + $0x4] sm:$0xf] %vm563_vm4, %v3735_v40 }
 0x114 PF: > { %p3511_p1 = scmp.ne.s32.totalorder %s4361_s20, 1 }
 0x116   : > { %608 = sbr.rel (%p3511_p1) target bundleno = 287 (0x11f), region = 76 }
 0x11b   : > { %vm610_vm7 = vcmask 27648   ;;  %v4383_v56 = vmov 0  }
 0x11c   : > { %611 = vst.msk [vmem:[#allocation2 + $0x48] sm:$0xf] %vm610_vm7, %v4383_v56  ;;  %612 = vst.msk [vmem:[#allocation2 + $0x4c] sm:$0xf] %vm610_vm7, %v4383_v56 }
 0x11d   : > { %614 = vst.msk [vmem:[#allocation2 + $0x98] sm:$0xf] %vm610_vm7, %v4383_v56  ;;  %615 = vst.msk [vmem:[#allocation2 + $0x9c] sm:$0xf] %vm610_vm7, %v4383_v56 }
 0x11e   : > { %617 = vst.msk [vmem:[#allocation2 + $0xe8] sm:$0xf] %vm610_vm7, %v4383_v56  ;;  %618 = vst.msk [vmem:[#allocation2 + $0xec] sm:$0xf] %vm610_vm7, %v4383_v56 }
 0x11f PF: > { %p3512_p2 = scmp.ge.s32.totalorder %s4361_s20, 1 }
 0x120   : > { %s3740_s16 = sshll.u32 (!%p3512_p2), %s4361_s20, 7 }
 0x121   : > { %622 = sbr.rel (%p3512_p2) target bundleno = 520 (0x208), region = 80  ;;  %s3444_s22 = scalar_lea.vmem (!%p3512_p2), %s4618_s27, %s3740_s16 }
 0x126   : > { %v647_v57 = vld [vmem:[%s5905_s5] sm:$0x3]  ;;  %vm658_vm8 = vcmask 1041408   ;;  %v629_v58 = vlaneseq  ;;  %v4384_v59 = vmov 0.0   ;;  %vm4385_vm9 = vmmov 0   ;;  %v3516_v36 = vld [vmem:[%s3444_s22 + $0x88] sm:$0xff] }
 0x127   : > { %3915 = vmatprep.subr.bf16.mxu0 %v4384_v59  ;;  %v660_v60 = vsel %vm658_vm8, %v647_v57, 0  ;;  %3917 = vmatprep.mubr.msk.bf16.mxu0 %vm4385_vm9, %v4384_v59  ;;  %v4386_v62 = vmov 0   ;;  %v3515_v35 = vld [vmem:[%s3444_s22 + $0x80] sm:$0xff]  ;;  %vm654_vm10 = vcmask 31744   ;;  %vm733_vm11 = vcmask 27648  }
 0x128   : > { %3916 = vmatpush3.bf16.msra.mxu0 %v660_v60  ;;  %v630_v61 = vshrl.u32 %v629_v58, 7  ;;  %4234 = vset.pattern.permute.xlu1 %v4386_v62 }
 0x129   : > { %4233 = vset.pattern.permute.xlu0 %v4386_v62  ;;  %754 = vperm.xlu1 %4234, %v4633_v19  }
 0x12a   : > { %v631_v63 = vsub.s32 0, %v630_v61  ;;  %714 = vperm.xlu0 %4233, %v4547_v3   ;;  %vm749_vm12 = vcmp.lt.s32.totalorder %v630_v61, 7  ;;  %vm709_vm13 = vcmp.lt.s32.totalorder %v630_v61, 1 }
 0x12c   : > { %v632_v37 = vrot.slane %v4527_v0, %v631_v63  ;;  %v640_v38 = vrot.slane %v4532_v1, %v631_v63  ;;  %v652_v47 = vrot.slane %v4542_v2, %v631_v63 }
 0x12d   : > { %759 = vperm.xlu1 %4234, %v4638_v20  }
 0x12e   : > { %v634_v39 = vmul.f32 %v3515_v35, %v632_v37  ;;  %v635_v41 = vmul.f32 %v3516_v36, %v632_v37  ;;  %719 = vperm.xlu0 %4233, %v4552_v4  }
 0x130   : > { %v642_v42 = vadd.f32 %v640_v38, %v634_v39  ;;  %v643_v43 = vadd.f32 %v640_v38, %v635_v41 }
 0x132   : > { %v644_v44 = vmax.f32 %v642_v42, 0.0  ;;  %v645_v45 = vmax.f32 %v643_v43, 0.0 }
 0x134   : > { %v646_v46 = vpack.c.bf16 %v645_v45, %v644_v44 }
 0x136   : > { %3918 = vmatmul.mubr.msk.bf16.vlgmr.msra.gmra.mxu0 %vm654_vm10, %v646_v46 }
 0x1a4   : > { %v755_v54 = vpop.permute.xlu1 %754 }
 0x1a5   : > { %v715_v55 = vpop.permute.xlu0 %714 }
 0x1a8   : > { %v760_v35 = vpop.permute.xlu1 %759 }
 0x1a9   : > { %v720_v38 = vpop.permute.xlu0 %719 }
 0x1f6   : > { %v696_v48 = vpop.f32.mrf.mxu0 }
 0x1f7   : > { %v697_v49 = vadd.f32 %v696_v48, %v652_v47 }
 0x1f8   : > { %v3919_v50 = vpop.f32.mrf.mxu0 }
 0x1f9   : > { %v703_v51 = vmax.f32 %v697_v49, 0.0 }
 0x1fa   : > { %v699_v52 = vpop.f32.mrf.mxu0 }
 0x1fb   : > { %v3743_v53 = vpack.c.bf16 %v703_v51, %v703_v51  ;;  %v700_v40 = vadd.f32 %v699_v52, %v652_v47  ;;  %v705_v58 = vrot.slane %v703_v51, 7  ;;  %v747_v59 = vrot.slane %v703_v51, 1 }
 0x1fc   : > { %v3920_v56 = vpop.f32.mrf.mxu0 }
 0x1fd   : > { %745 = vst.msk [vmem:[#allocation2 + $0x98] sm:$0xf] %vm733_vm11, %v3743_v53  ;;  %v704_v57 = vmax.f32 %v700_v40, 0.0 }
 0x1ff   : > { %v706_v60 = vrot.slane %v704_v57, 7  ;;  %v3744_v62 = vpack.c.bf16 %v704_v57, %v704_v57  ;;  %v748_v63 = vrot.slane %v704_v57, 1 }
 0x201   : > { %746 = vst.msk [vmem:[#allocation2 + $0x9c] sm:$0xf] %vm733_vm11, %v3744_v62  ;;  %v750_v36 = vsel %vm749_vm12, %v747_v59, %v748_v63  ;;  %v751_v37 = vsel %vm749_vm12, %v748_v63, %v747_v59  ;;  %v710_v39 = vsel %vm709_vm13, %v705_v58, %v706_v60  ;;  %v711_v41 = vsel %vm709_vm13, %v706_v60, %v705_v58 }
 0x202   : > { %v762_v42 = vmul.f32 %v755_v54, %v750_v36  ;;  %v763_v43 = vmul.f32 %v760_v35, %v751_v37  ;;  %v722_v44 = vmul.f32 %v715_v55, %v711_v41  ;;  %v723_v45 = vmul.f32 %v720_v38, %v710_v39 }
 0x204   : > { %v3745_v46 = vpack.c.bf16 %v762_v42, %v762_v42  ;;  %v3746_v47 = vpack.c.bf16 %v763_v43, %v763_v43  ;;  %v3741_v48 = vpack.c.bf16 %v722_v44, %v722_v44  ;;  %v3742_v61 = vpack.c.bf16 %v723_v45, %v723_v45 }
 0x206   : > { %773 = vst.msk [vmem:[#allocation2 + $0xe8] sm:$0xf] %vm733_vm11, %v3745_v46  ;;  %774 = vst.msk [vmem:[#allocation2 + $0xec] sm:$0xf] %vm733_vm11, %v3746_v47 }
 0x207   : > { %734 = vst.msk [vmem:[#allocation2 + $0x48] sm:$0xf] %vm733_vm11, %v3741_v48  ;;  %735 = vst.msk [vmem:[#allocation2 + $0x4c] sm:$0xf] %vm733_vm11, %v3742_v61 }
 0x208 PF: > { %v861_v49 = vld [vmem:[%s5905_s5] sm:$0x3]  ;;  %vm894_vm14 = vcmask 1041408   ;;  %s3747_s13 = sshll.u32 %s4361_s20, 7  ;;  %v794_v50 = vlaneseq  ;;  %v4387_v52 = vmov 0   ;;  %vm869_vm15 = vcmask 31744  }
 0x209   : > { %4137 = vmatprep.subr.msk.bf16.mxu0 %vm894_vm14, %v861_v49  ;;  %v896_v51 = vsel %vm894_vm14, %v861_v49, 0  ;;  %s4761_s29 = scalar_lea.vmem %s4618_s27, %s3747_s13  ;;  %4236 = vset.pattern.permute.xlu1 %v4387_v52  ;;  %vm1352_vm0 = vcmask 27648   ;;  %vm3373_vm3 = vcmask 130048   ;;  %s3796_s27 = sshll.u32 %s4361_s20, 4 }
 0x20a   : > { %3922 = vmatpush3.bf16.msra.mxu0 %v896_v51  ;;  %v4763_v53 = vshrl.u32 %v794_v50, 7  ;;  %4235 = vset.pattern.permute.xlu0 %v4387_v52  ;;  %v777_v54 = vld [vmem:[%s4761_s29] sm:$0xff]  ;;  %v778_v55 = vld [vmem:[%s4761_s29 + $0x8] sm:$0xff]  ;;  %v779_v56 = vld [vmem:[%s4761_s29 + $0x10] sm:$0xff]  ;;  %s3729_s14 = sshll.u32 %s4365_s21, 5  ;;  %s3407_s26 = sshll.u32 %s4711_s28, 4  ;;  %s5836_s26 = int_to_ptr.vmem [resolvable:$true] %s3407_s26 }
 0x20b   : > { %1058 = vperm.xlu1 %4236, %v4557_v5   ;;  %1048 = vperm.xlu0 %4235, %v4547_v3   ;;  %v780_v57 = vld [vmem:[%s4761_s29 + $0x18] sm:$0xff]  ;;  %v781_v58 = vld [vmem:[%s4761_s29 + $0x20] sm:$0xff]  ;;  %v782_v62 = vld [vmem:[%s4761_s29 + $0x28] sm:$0xff]  ;;  %s3404_s3 = sadd.s32 %s3796_s27, %s3729_s14  ;;  %s6011_s16 = sand.u32 1, %s4353_s18  }
 0x20c   : > { %v4770_v40 = vsub.s32 0, %v4763_v53  ;;  %v783_v5 = vld [vmem:[%s4761_s29 + $0x30] sm:$0xff]  ;;  %v784_v63 = vld [vmem:[%s4761_s29 + $0x38] sm:$0xff]  ;;  %v785_v45 = vld [vmem:[%s4761_s29 + $0x40] sm:$0xff]  ;;  %vm1029_vm1 = vcmp.lt.s32.totalorder %v4763_v53, 1  ;;  %vm1158_vm2 = vcmp.lt.s32.totalorder %v4763_v53, 7 }
 0x20d   : > { %v786_v46 = vld [vmem:[%s4761_s29 + $0x48] sm:$0xff]  ;;  %s3730_s20 = sshll.u32 %s3404_s3, 7  ;;  %s5849_s22 = scalar_lea.sflag [#allocation4], %s6011_s16 }
 0x20e   : > { %v4777_v59 = vrot.slane %v4527_v0, %v4770_v40  ;;  %v4781_v60 = vrot.slane %v4532_v1, %v4770_v40  ;;  %s5843_s15 = scalar_lea.hbm %s5911_s11, %s3730_s20  ;;  %s4285_s23 = scalar_lea.vmem %s5836_s26, 2048 }
 0x20f   : > { %1063 = vperm.xlu1 %4236, %v4562_v6   ;;  %1053 = vperm.xlu0 %4235, %v4552_v4   ;;  %p4286_p4 = scmp.ne.s32.totalorder %s5836_s26, %s4285_s23  ;;  %s4388_s25 = smov [#allocation3]  }
 0x210   : > { %v799_v3 = vmul.f32 %v4777_v59, %v777_v54  ;;  %v800_v35 = vmul.f32 %v4777_v59, %v778_v55  ;;  %v801_v0 = vmul.f32 %v4777_v59, %v779_v56  ;;  %v802_v36 = vmul.f32 %v4777_v59, %v780_v57  ;;  %s4289_s13 = sshll.u32 %s4388_s25, 4  ;;  %s4290_s13 = int_to_ptr.vmem [resolvable:$false] %s4289_s13 }
 0x211   : > { %v803_v1 = vmul.f32 %v4777_v59, %v781_v58  ;;  %v804_v37 = vmul.f32 %v4777_v59, %v782_v62  ;;  %v805_v38 = vmul.f32 %v4777_v59, %v783_v5  ;;  %v806_v6 = vmul.f32 %v4777_v59, %v784_v63  ;;  %v787_v58 = vld [vmem:[%s4761_s29 + $0x50] sm:$0xff]  ;;  %v788_v62 = vld [vmem:[%s4761_s29 + $0x58] sm:$0xff]  ;;  %v789_v63 = vld [vmem:[%s4761_s29 + $0x60] sm:$0xff]  ;;  %p4287_p5 = pnand %p4286_p4, %p4502_p3  ;;  %p4292_p7 = scmp.lt.s32.totalorder %s5836_s26, %s4290_s13 }
 0x212   : > { %v821_v4 = vadd.f32 %v4781_v60, %v799_v3  ;;  %v822_v39 = vadd.f32 %v4781_v60, %v800_v35  ;;  %v823_v41 = vadd.f32 %v4781_v60, %v801_v0  ;;  %v824_v42 = vadd.f32 %v4781_v60, %v802_v36 }
 0x213   : > { %v825_v43 = vadd.f32 %v4781_v60, %v803_v1  ;;  %v826_v44 = vadd.f32 %v4781_v60, %v804_v37  ;;  %1182 = vperm.xlu1 %4236, %v4638_v20   ;;  %1177 = vperm.xlu0 %4235, %v4633_v19   ;;  %v827_v52 = vadd.f32 %v4781_v60, %v805_v38  ;;  %v790_v19 = vld [vmem:[%s4761_s29 + $0x68] sm:$0xff]  ;;  %p4288_p6 = pneg %p4287_p5 }
 0x214   : > { %v837_v47 = vmax.f32 %v821_v4, 0.0  ;;  %v838_v48 = vmax.f32 %v822_v39, 0.0  ;;  %v839_v61 = vmax.f32 %v823_v41, 0.0  ;;  %v840_v49 = vmax.f32 %v824_v42, 0.0 }
 0x215   : > { %v841_v50 = vmax.f32 %v825_v43, 0.0  ;;  %v842_v51 = vmax.f32 %v826_v44, 0.0  ;;  %v828_v54 = vadd.f32 %v4781_v60, %v806_v6  ;;  %v807_v20 = vmul.f32 %v4777_v59, %v785_v45 }
 0x216   : > { %v4808_v55 = vpack.c.bf16 %v838_v48, %v837_v47  ;;  %v4810_v56 = vpack.c.bf16 %v840_v49, %v839_v61  ;;  %v808_v57 = vmul.f32 %v4777_v59, %v786_v46  ;;  %v843_v0 = vmax.f32 %v827_v52, 0.0  ;;  %v791_v46 = vld [vmem:[%s4761_s29 + $0x70] sm:$0xff]  ;;  %v792_v47 = vld [vmem:[%s4761_s29 + $0x78] sm:$0xff]  ;;  %s4291_s29 = scalar_lea.vmem %s4290_s13, 4096 }
 0x217   : > { %v4816_v5 = vpack.c.bf16 %v842_v51, %v841_v50  ;;  %1192 = vperm.xlu1 %4236, %v4648_v22   ;;  %v829_v3 = vadd.f32 %v4781_v60, %v807_v20  ;;  %v844_v36 = vmax.f32 %v828_v54, 0.0  ;;  %v809_v1 = vmul.f32 %v4777_v59, %v787_v58  ;;  %1187 = vperm.xlu0 %4235, %v4643_v21   ;;  %p4293_p9 = scmp.lt.s32.totalorder %s4291_s29, %s4285_s23 }
 0x218   : > { %3923 = vmatprep.mubr.msk.bf16.mxu0 %vm869_vm15, %v4808_v55  ;;  %v830_v35 = vadd.f32 %v4781_v60, %v808_v57  ;;  %v810_v37 = vmul.f32 %v4777_v59, %v788_v62  ;;  %v811_v6 = vmul.f32 %v4777_v59, %v789_v63  ;;  %v812_v4 = vmul.f32 %v4777_v59, %v790_v19 }
 0x219   : > { %3924 = vmatmul.mubr.msk.bf16.vlgmr.msra.gmra.mxu0 %vm869_vm15, %v4810_v56  ;;  %v845_v22 = vmax.f32 %v829_v3, 0.0  ;;  %v4835_v39 = vpack.c.bf16 %v844_v36, %v843_v0  ;;  %v831_v41 = vadd.f32 %v4781_v60, %v809_v1  ;;  %v813_v48 = vmul.f32 %v4777_v59, %v791_v46  ;;  %p4294_p10 = por %p4293_p9, %p4292_p7 }
 0x21a   : > { %3927 = vmatprep.mubr.msk.bf16.mxu0 %vm869_vm15, %v4816_v5  ;;  %v846_v38 = vmax.f32 %v830_v35, 0.0  ;;  %v832_v42 = vadd.f32 %v4781_v60, %v810_v37  ;;  %v833_v44 = vadd.f32 %v4781_v60, %v811_v6  ;;  %v834_v45 = vadd.f32 %v4781_v60, %v812_v4 }
 0x21b   : > { %1073 = vperm.xlu1 %4236, %v4573_v8   ;;  %1068 = vperm.xlu0 %4235, %v4567_v7   ;;  %v847_v8 = vmax.f32 %v831_v41, 0.0  ;;  %v814_v61 = vmul.f32 %v4777_v59, %v792_v47  ;;  %p4295_p11 = pnand %p4294_p10, %p4288_p6 }
 0x21c   : > { %v4839_v43 = vpack.c.bf16 %v846_v38, %v845_v22  ;;  %v848_v21 = vmax.f32 %v832_v42, 0.0  ;;  %v849_v49 = vmax.f32 %v833_v44, 0.0  ;;  %v850_v50 = vmax.f32 %v834_v45, 0.0 }
 0x21d   : > { %v836_v51 = vadd.f32 %v4781_v60, %v814_v61 }
 0x21e   : > { %v4855_v7 = vpack.c.bf16 %v848_v21, %v847_v8  ;;  %v4859_v52 = vpack.c.bf16 %v850_v50, %v849_v49 }
 0x21f   : > { %1083 = vperm.xlu1 %4236, %v4583_v10   ;;  %1078 = vperm.xlu0 %4235, %v4578_v9   ;;  %v835_v10 = vadd.f32 %v4781_v60, %v813_v48  ;;  %v852_v54 = vmax.f32 %v836_v51, 0.0 }
 0x221   : > { %3928 = vmatmul.mubr.msk.bf16.gmra.mxu0 %vm869_vm15, %v4835_v39  ;;  %v851_v59 = vmax.f32 %v835_v10, 0.0 }
 0x222   : > { %3931 = vmatprep.mubr.msk.bf16.mxu0 %vm869_vm15, %v4839_v43 }
 0x223   : > { %1202 = vperm.xlu1 %4236, %v4658_v24   ;;  %1197 = vperm.xlu0 %4235, %v4653_v23   ;;  %v4869_v9 = vpack.c.bf16 %v852_v54, %v851_v59 }
 0x227   : > { %1212 = vperm.xlu1 %4236, %v4668_v26   ;;  %1207 = vperm.xlu0 %4235, %v4663_v25  }
 0x229   : > { %3932 = vmatmul.mubr.msk.bf16.gmra.mxu0 %vm869_vm15, %v4855_v7 }
 0x22a   : > { %3935 = vmatprep.mubr.msk.bf16.mxu0 %vm869_vm15, %v4859_v52 }
 0x22b   : > { %1093 = vperm.xlu1 %4236, %v4593_v12   ;;  %1088 = vperm.xlu0 %4235, %v4588_v11   ;;  %v3582_v11 = vld [vmem:[%s5908_s8 + $0x8] sm:$0x3] }
 0x22c   : > { %4138 = vmatprep.subr.msk.bf16.mxu1 %vm894_vm14, %v3582_v11  ;;  %v1544_v12 = vsel %vm894_vm14, %v3582_v11, 0 }
 0x22d   : > { %3940 = vmatpush3.bf16.msra.mxu1 %v1544_v12 }
 0x22f   : > { %1103 = vperm.xlu1 %4236, %v4603_v14   ;;  %1098 = vperm.xlu0 %4235, %v4598_v13   ;;  %v3581_v13 = vld [vmem:[%s5908_s8 + $0x6] sm:$0x3]  ;;  %v3599_v14 = vld [vmem:[%s5908_s8 + $0xa] sm:$0x3] }
 0x230   : > { %4139 = vmatprep.subr.msk.bf16.mxu0 %vm894_vm14, %v3581_v13  ;;  %4140 = vmatprep.subr.msk.bf16.mxu1 %vm894_vm14, %v3599_v14  ;;  %v1794_v61 = vsel %vm894_vm14, %v3599_v14, 0 }
 0x231   : > { %3936 = vmatmul.mubr.msk.bf16.gmra.mxu0 %vm869_vm15, %v4869_v9 }
 0x233   : > { %1222 = vperm.xlu1 %4236, %v4678_v28   ;;  %1217 = vperm.xlu0 %4235, %v4673_v27  }
 0x237   : > { %1232 = vperm.xlu1 %4236, %v4688_v30   ;;  %1227 = vperm.xlu0 %4235, %v4683_v29  }
 0x23b   : > { %1113 = vperm.xlu1 %4236, %v4613_v16   ;;  %1108 = vperm.xlu0 %4235, %v4608_v15   ;;  %v1668_v15 = vsel %vm894_vm14, %v3581_v13, 0  ;;  %v4905_v16 = vld [vmem:[%s5908_s8] sm:$0x3] }
 0x23c   : > { %3958 = vmatpush3.bf16.msra.mxu0 %v1668_v15 }
 0x23d   : > { %4141 = vmatprep.subr.msk.bf16.mxu0 %vm894_vm14, %v4905_v16 }
 0x23f   : > { %1123 = vperm.xlu1 %4236, %v4628_v18   ;;  %1118 = vperm.xlu0 %4235, %v4623_v17  }
 0x243   : > { %1242 = vperm.xlu1 %4236, %v4698_v32   ;;  %1237 = vperm.xlu0 %4235, %v4693_v31  }
 0x247   : > { %1252 = vperm.xlu1 %4236, %v4708_v34   ;;  %1247 = vperm.xlu0 %4235, %v4703_v33   ;;  %v4929_v33 = vrot.slane %v4542_v2, %v4770_v40 }
 0x286   : > { %v1059_v17 = vpop.permute.xlu1 %1058  ;;  %v4909_v18 = vpop.permute.xlu0 %1048 }
 0x28a   : > { %v1064_v23 = vpop.permute.xlu1 %1063  ;;  %v4911_v24 = vpop.permute.xlu0 %1053 }
 0x28e   : > { %v4913_v25 = vpop.permute.xlu1 %1182  ;;  %v4915_v26 = vpop.permute.xlu0 %1177 }
 0x292   : > { %v4917_v27 = vpop.permute.xlu1 %1192  ;;  %v1188_v28 = vpop.permute.xlu0 %1187 }
 0x296   : > { %v4919_v29 = vpop.permute.xlu1 %1073  ;;  %v4921_v30 = vpop.permute.xlu0 %1068 }
 0x29a   : > { %v4923_v31 = vpop.permute.xlu1 %1083  ;;  %v4925_v32 = vpop.permute.xlu0 %1078 }
 0x29e   : > { %v4931_v60 = vpop.permute.xlu1 %1202  ;;  %v4933_v20 = vpop.permute.xlu0 %1197 }
 0x2a2   : > { %v4944_v0 = vpop.permute.xlu1 %1212  ;;  %v4946_v36 = vpop.permute.xlu0 %1207 }
 0x2a6   : > { %v4984_v54 = vpop.permute.xlu1 %1093  ;;  %v4986_v11 = vpop.permute.xlu0 %1088 }
 0x2d9   : > { %v3925_v34 = vpop.f32.mrf.mxu0 }
 0x2da   : > { %v941_v57 = vadd.f32 %v3925_v34, %v4929_v33  ;;  %v3624_v34 = vld [vmem:[%s5908_s8 + $0x2] sm:$0x3] }
 0x2db   : > { %v932_v58 = vpop.f32.mrf.mxu0 }
 0x2dc   : > { %v4936_v62 = vmax.f32 %v941_v57, 0.0  ;;  %v933_v63 = vadd.f32 %v932_v58, %v4929_v33 }
 0x2dd   : > { %v3926_v19 = vpop.f32.mrf.mxu0 }
 0x2de   : > { %v3766_v3 = vpack.c.bf16 %v4936_v62, %v4936_v62  ;;  %v4941_v35 = vmax.f32 %v933_v63, 0.0  ;;  %v944_v2 = vadd.f32 %v3926_v19, %v4929_v33  ;;  %v1013_v6 = vrot.slane %v4936_v62, 7 }
 0x2df   : > { %v935_v40 = vpop.f32.mrf.mxu0  ;;  %v1144_v42 = vrot.slane %v4936_v62, 1  ;;  %v5011_v63 = vsel %vm894_vm14, %v4905_v16, 0 }
 0x2e0   : > { %1428 = vst.msk [vmem:[#allocation2 + $0x60] sm:$0xf] %vm1352_vm0, %v3766_v3  ;;  %v3764_v1 = vpack.c.bf16 %v4941_v35, %v4941_v35  ;;  %v936_v37 = vadd.f32 %v935_v40, %v4929_v33  ;;  %v4952_v22 = vmax.f32 %v944_v2, 0.0 }
 0x2e1   : > { %v3929_v38 = vpop.f32.mrf.mxu0 }
 0x2e2   : > { %1426 = vst.msk [vmem:[#allocation2 + $0x58] sm:$0xf] %vm1352_vm0, %v3764_v1  ;;  %v4958_v4 = vmax.f32 %v936_v37, 0.0  ;;  %v957_v41 = vadd.f32 %v3929_v38, %v4929_v33  ;;  %v1014_v44 = vrot.slane %v4952_v22, 7  ;;  %v1145_v45 = vrot.slane %v4952_v22, 1 }
 0x2e3   : > { %v3767_v46 = vpack.c.bf16 %v4952_v22, %v4952_v22  ;;  %v948_v47 = vpop.f32.mrf.mxu0  ;;  %v1280_v15 = vpack.c.bf16 %v4952_v22, %v4936_v62  ;;  %v5026_v38 = vsel %vm894_vm14, %v3624_v34, 0 }
 0x2e4   : > { %v1012_v8 = vrot.slane %v4958_v4, 7  ;;  %v3765_v21 = vpack.c.bf16 %v4958_v4, %v4958_v4  ;;  %v4969_v48 = vmax.f32 %v957_v41, 0.0  ;;  %v1042_v49 = vsel %vm1029_vm1, %v1013_v6, %v1014_v44 }
 0x2e5   : > { %v1171_v50 = vsel %vm1158_vm2, %v1144_v42, %v1145_v45  ;;  %1429 = vst.msk [vmem:[#allocation2 + $0x64] sm:$0xf] %vm1352_vm0, %v3767_v46  ;;  %v949_v10 = vadd.f32 %v948_v47, %v4929_v33  ;;  %v3930_v51 = vpop.f32.mrf.mxu0  ;;  %v1279_v59 = vpack.c.bf16 %v4958_v4, %v4941_v35  ;;  %v4988_v12 = vmul.f32 %v1064_v23, %v1042_v49 }
 0x2e6   : > { %v4990_v13 = vmul.f32 %v1188_v28, %v1171_v50  ;;  %v1043_v14 = vsel %vm1029_vm1, %v1012_v8, %v1013_v6  ;;  %1427 = vst.msk [vmem:[#allocation2 + $0x5c] sm:$0xf] %vm1352_vm0, %v3765_v21  ;;  %v3770_v23 = vpack.c.bf16 %v4969_v48, %v4969_v48  ;;  %v1143_v40 = vrot.slane %v4958_v4, 1 }
 0x2e7   : > { %v5002_v57 = vmul.f32 %v1059_v17, %v1043_v14  ;;  %v5006_v28 = vmax.f32 %v949_v10, 0.0  ;;  %3941 = vmatprep.mubr.msk.bf16.mxu1 %vm869_vm15, %v1279_v59  ;;  %v951_v58 = vpop.f32.mrf.mxu0  ;;  %v3751_v19 = vpack.c.bf16 %v4988_v12, %v4988_v12  ;;  %v960_v17 = vadd.f32 %v3930_v51, %v4929_v33  ;;  %v5046_v51 = vpop.permute.xlu1 %1103 }
 0x2e8   : > { %v3782_v3 = vpack.c.bf16 %v4990_v13, %v4990_v13  ;;  %v952_v2 = vadd.f32 %v951_v58, %v4929_v33  ;;  %3942 = vmatmul.mubr.msk.bf16.vlgmr.msra.gmra.mxu1 %vm869_vm15, %v1280_v15  ;;  %1432 = vst.msk [vmem:[#allocation2 + $0x70] sm:$0xf] %vm1352_vm0, %v3770_v23  ;;  %v5919_v21 = vrot.slane %v4941_v35, 7  ;;  %v5048_v59 = vpop.permute.xlu0 %1098 }
 0x2e9   : > { %v3750_v1 = vpack.c.bf16 %v5002_v57, %v5002_v57  ;;  %v5920_v16 = vrot.slane %v5006_v28, 1  ;;  %3976 = vmatpush3.bf16.msra.mxu1 %v1794_v61  ;;  %v3933_v37 = vpop.f32.mrf.mxu0  ;;  %1356 = vst.msk [vmem:[#allocation2 + $0x14] sm:$0xf] %vm1352_vm0, %v3751_v19  ;;  %v3768_v6 = vpack.c.bf16 %v5006_v28, %v5006_v28  ;;  %v5032_v41 = vmax.f32 %v960_v17, 0.0 }
 0x2ea   : > { %1501 = vst.msk [vmem:[#allocation2 + $0xb0] sm:$0xf] %vm1352_vm0, %v3782_v3  ;;  %v5034_v46 = vmax.f32 %v952_v2, 0.0  ;;  %v973_v47 = vadd.f32 %v3933_v37, %v4929_v33  ;;  %4142 = vmatprep.subr.msk.bf16.mxu1 %vm894_vm14, %v3624_v34  ;;  %v5917_v61 = vrot.slane %v4941_v35, 1  ;;  %v1015_v15 = vrot.slane %v5006_v28, 7 }
 0x2eb   : > { %1355 = vst.msk [vmem:[#allocation2 + $0x10] sm:$0xf] %vm1352_vm0, %v3750_v1  ;;  %v1170_v50 = vsel %vm1158_vm2, %v1145_v45, %v5920_v16  ;;  %v964_v10 = vpop.f32.mrf.mxu0  ;;  %1430 = vst.msk [vmem:[#allocation2 + $0x68] sm:$0xf] %vm1352_vm0, %v3768_v6  ;;  %v3771_v23 = vpack.c.bf16 %v5032_v41, %v5032_v41  ;;  %v1172_v3 = vsel %vm1158_vm2, %v1143_v40, %v1144_v42  ;;  %v5934_v16 = vrot.slane %v4969_v48, 1 }
 0x2ec   : > { %v5053_v34 = vmul.f32 %v4917_v27, %v1170_v50  ;;  %v3769_v45 = vpack.c.bf16 %v5034_v46, %v5034_v46  ;;  %v5060_v58 = vmax.f32 %v973_v47, 0.0  ;;  %v1173_v27 = vsel %vm1158_vm2, %v5917_v61, %v1143_v40 }
 0x2ed   : > { %v3934_v19 = vpop.f32.mrf.mxu0  ;;  %1433 = vst.msk [vmem:[#allocation2 + $0x74] sm:$0xf] %vm1352_vm0, %v3771_v23  ;;  %v965_v2 = vadd.f32 %v964_v10, %v4929_v33  ;;  %v1044_v62 = vsel %vm1029_vm1, %v5919_v21, %v1012_v8  ;;  %v5918_v40 = vrot.slane %v5034_v46, 7  ;;  %v1281_v6 = vpack.c.bf16 %v5034_v46, %v5006_v28 }
 0x2ee   : > { %v3783_v17 = vpack.c.bf16 %v5053_v34, %v5053_v34  ;;  %v976_v1 = vadd.f32 %v3934_v19, %v4929_v33  ;;  %1431 = vst.msk [vmem:[#allocation2 + $0x6c] sm:$0xf] %vm1352_vm0, %v3769_v45  ;;  %v3774_v37 = vpack.c.bf16 %v5060_v58, %v5060_v58  ;;  %v1282_v10 = vpack.c.bf16 %v5032_v41, %v4969_v48 }
 0x2ef   : > { %v967_v47 = vpop.f32.mrf.mxu0  ;;  %v5089_v4 = vmax.f32 %v965_v2, 0.0  ;;  %3945 = vmatprep.mubr.msk.bf16.mxu1 %vm869_vm15, %v1281_v6  ;;  %v5101_v19 = vmul.f32 %v4915_v26, %v1173_v27  ;;  %v5105_v2 = vpop.permute.xlu0 %1217 }
 0x2f0   : > { %1502 = vst.msk [vmem:[#allocation2 + $0xb4] sm:$0xf] %vm1352_vm0, %v3783_v17  ;;  %v5091_v50 = vmax.f32 %v976_v1, 0.0  ;;  %v968_v8 = vadd.f32 %v967_v47, %v4929_v33  ;;  %1436 = vst.msk [vmem:[#allocation2 + $0x80] sm:$0xf] %vm1352_vm0, %v3774_v37  ;;  %v5103_v17 = vpop.permute.xlu1 %1222  ;;  %v1147_v47 = vrot.slane %v5034_v46, 1  ;;  %3946 = vmatmul.mubr.msk.bf16.gmra.mxu1 %vm869_vm15, %v1282_v10  ;;  %v5113_v37 = vmul.f32 %v4913_v25, %v1172_v3 }
 0x2f1   : > { %v3937_v45 = vpop.f32.mrf.mxu0  ;;  %v3772_v61 = vpack.c.bf16 %v5089_v4, %v5089_v4  ;;  %v5121_v1 = vmul.f32 %v4911_v24, %v1044_v62  ;;  %v3780_v3 = vpack.c.bf16 %v5101_v19, %v5101_v19 }
 0x2f2   : > { %v3775_v26 = vpack.c.bf16 %v5091_v50, %v5091_v50  ;;  %v5117_v27 = vmax.f32 %v968_v8, 0.0  ;;  %v989_v6 = vadd.f32 %v3937_v45, %v4929_v33  ;;  %v3781_v49 = vpack.c.bf16 %v5113_v37, %v5113_v37 }
 0x2f3   : > { %v980_v23 = vpop.f32.mrf.mxu0  ;;  %1434 = vst.msk [vmem:[#allocation2 + $0x78] sm:$0xf] %vm1352_vm0, %v3772_v61  ;;  %v1040_v61 = vsel %vm1029_vm1, %v1015_v15, %v5918_v40  ;;  %1499 = vst.msk [vmem:[#allocation2 + $0xa8] sm:$0xf] %vm1352_vm0, %v3780_v3  ;;  %v5159_v21 = vpop.permute.xlu0 %1227 }
 0x2f4   : > { %v981_v25 = vadd.f32 %v980_v23, %v4929_v33  ;;  %1437 = vst.msk [vmem:[#allocation2 + $0x84] sm:$0xf] %vm1352_vm0, %v3775_v26  ;;  %v3773_v24 = vpack.c.bf16 %v5117_v27, %v5117_v27  ;;  %v5134_v62 = vmax.f32 %v989_v6, 0.0  ;;  %v1283_v26 = vpack.c.bf16 %v5117_v27, %v5089_v4  ;;  %v5157_v40 = vpop.permute.xlu1 %1232  ;;  %1500 = vst.msk [vmem:[#allocation2 + $0xac] sm:$0xf] %vm1352_vm0, %v3781_v49 }
 0x2f5   : > { %v3938_v10 = vpop.f32.mrf.mxu0  ;;  %v1019_v6 = vrot.slane %v5089_v4, 7  ;;  %v1168_v49 = vsel %vm1158_vm2, %v1147_v47, %v5934_v16 }
 0x2f6   : > { %v5142_v23 = vmax.f32 %v981_v25, 0.0  ;;  %v992_v45 = vadd.f32 %v3938_v10, %v4929_v33  ;;  %1435 = vst.msk [vmem:[#allocation2 + $0x7c] sm:$0xf] %vm1352_vm0, %v3773_v24  ;;  %v3778_v25 = vpack.c.bf16 %v5134_v62, %v5134_v62  ;;  %v3749_v10 = vpack.c.bf16 %v5121_v1, %v5121_v1  ;;  %3949 = vmatprep.mubr.msk.bf16.mxu1 %vm869_vm15, %v1283_v26 }
 0x2f7   : > { %v983_v8 = vpop.f32.mrf.mxu0  ;;  %v1284_v24 = vpack.c.bf16 %v5091_v50, %v5060_v58  ;;  %v5180_v26 = vmul.f32 %v4919_v29, %v1040_v61 }
 0x2f8   : > { %v3776_v3 = vpack.c.bf16 %v5142_v23, %v5142_v23  ;;  %v5164_v14 = vmax.f32 %v992_v45, 0.0  ;;  %1440 = vst.msk [vmem:[#allocation2 + $0x90] sm:$0xf] %vm1352_vm0, %v3778_v25  ;;  %v984_v42 = vadd.f32 %v983_v8, %v4929_v33  ;;  %1354 = vst.msk [vmem:[#allocation2 + $0xc] sm:$0xf] %vm1352_vm0, %v3749_v10  ;;  %v1041_v45 = vsel %vm1029_vm1, %v1014_v44, %v1015_v15 }
 0x2f9   : > { %v1020_v33 = vrot.slane %v5117_v27, 7  ;;  %3950 = vmatmul.mubr.msk.bf16.gmra.mxu1 %vm869_vm15, %v1284_v24  ;;  %v1130_v44 = vmul.f32 %v4921_v30, %v1041_v45  ;;  %v3753_v16 = vpack.c.bf16 %v5180_v26, %v5180_v26  ;;  %v5935_v15 = vrot.slane %v5006_v28, 1 }
 0x2fa   : > { %1438 = vst.msk [vmem:[#allocation2 + $0x88] sm:$0xf] %vm1352_vm0, %v3776_v3  ;;  %v5921_v8 = vrot.slane %v5164_v14, 7  ;;  %v3779_v22 = vpack.c.bf16 %v5164_v14, %v5164_v14  ;;  %v5193_v29 = vmax.f32 %v984_v42, 0.0  ;;  %v5936_v10 = vrot.slane %v4941_v35, 7 }
 0x2fb   : > { %v1169_v61 = vsel %vm1158_vm2, %v5935_v15, %v1147_v47  ;;  %v5213_v30 = vmul.f32 %v4931_v60, %v1168_v49  ;;  %v5937_v28 = vrot.slane %v5032_v41, 7  ;;  %v5938_v24 = vrot.slane %v4969_v48, 7  ;;  %1358 = vst.msk [vmem:[#allocation2 + $0x1c] sm:$0xf] %vm1352_vm0, %v3753_v16  ;;  %v5229_v60 = vpop.permute.xlu1 %1113  ;;  %v5231_v49 = vpop.permute.xlu0 %1108 }
 0x2fc   : > { %1441 = vst.msk [vmem:[#allocation2 + $0x94] sm:$0xf] %vm1352_vm0, %v3779_v22  ;;  %v1045_v42 = vsel %vm1029_vm1, %v5921_v8, %v5936_v10  ;;  %v5210_v3 = vmul.f32 %v4933_v20, %v1169_v61  ;;  %v1151_v45 = vrot.slane %v5117_v27, 1  ;;  %v3777_v22 = vpack.c.bf16 %v5193_v29, %v5193_v29 }
 0x2fd   : > { %v1038_v47 = vsel %vm1029_vm1, %v5938_v24, %v5937_v28  ;;  %v1285_v15 = vpack.c.bf16 %v5193_v29, %v5142_v23  ;;  %v1287_v20 = vpack.c.bf16 %v5113_v37, %v5101_v19  ;;  %v1286_v10 = vpack.c.bf16 %v5164_v14, %v5134_v62 }
 0x2fe   : > { %v1126_v28 = vmul.f32 %v4909_v18, %v1045_v42  ;;  %v3752_v24 = vpack.c.bf16 %v1130_v44, %v1130_v44  ;;  %1439 = vst.msk [vmem:[#allocation2 + $0x8c] sm:$0xf] %vm1352_vm0, %v3777_v22  ;;  %v3784_v19 = vpack.c.bf16 %v5210_v3, %v5210_v3  ;;  %v3785_v37 = vpack.c.bf16 %v5213_v30, %v5213_v30 }
 0x2ff   : > { %3953 = vmatprep.mubr.msk.bf16.mxu1 %vm869_vm15, %v1285_v15  ;;  %v5939_v16 = vrot.slane %v4969_v48, 7  ;;  %v5940_v61 = vrot.slane %v5034_v46, 7  ;;  %v5250_v18 = vmul.f32 %v4923_v31, %v1038_v47  ;;  %v1036_v25 = vsel %vm1029_vm1, %v1019_v6, %v1020_v33 }
 0x300   : > { %v1271_v42 = vpack.c.bf16 %v5121_v1, %v1126_v28  ;;  %v3748_v22 = vpack.c.bf16 %v1126_v28, %v1126_v28  ;;  %1357 = vst.msk [vmem:[#allocation2 + $0x18] sm:$0xf] %vm1352_vm0, %v3752_v24  ;;  %1503 = vst.msk [vmem:[#allocation2 + $0xb8] sm:$0xf] %vm1352_vm0, %v3784_v19  ;;  %v5941_v46 = vrot.slane %v5032_v41, 7  ;;  %v5943_v47 = vrot.slane %v5032_v41, 1 }
 0x301   : > { %v1039_v8 = vsel %vm1029_vm1, %v5940_v61, %v5939_v16  ;;  %1504 = vst.msk [vmem:[#allocation2 + $0xbc] sm:$0xf] %vm1352_vm0, %v3785_v37  ;;  %v3755_v31 = vpack.c.bf16 %v5250_v18, %v5250_v18  ;;  %v1023_v28 = vrot.slane %v5142_v23, 7  ;;  %3954 = vmatmul.mubr.msk.bf16.gmra.mxu1 %vm869_vm15, %v1286_v10  ;;  %v5291_v24 = vld [vmem:[%s5908_s8 + $0x4] sm:$0x3]  ;;  %v1024_v19 = vrot.slane %v5193_v29, 7 }
 0x302   : > { %v5255_v15 = vmul.f32 %v4925_v32, %v1039_v8  ;;  %v1037_v1 = vsel %vm1029_vm1, %v5941_v46, %v1019_v6  ;;  %v5270_v32 = vmul.f32 %v4984_v54, %v1036_v25  ;;  %v5942_v8 = vrot.slane %v5089_v4, 1  ;;  %1353 = vst.msk [vmem:[#allocation2 + $0x8] sm:$0xf] %vm1352_vm0, %v3748_v22  ;;  %3959 = vmatprep.mubr.msk.bf16.mxu0 %vm869_vm15, %v1271_v42 }
 0x303   : > { %v1273_v6 = vpack.c.bf16 %v5180_v26, %v1130_v44  ;;  %v5286_v25 = vmul.f32 %v4986_v11, %v1037_v1  ;;  %3977 = vmatprep.mubr.msk.bf16.mxu1 %vm869_vm15, %v1287_v20  ;;  %v5944_v10 = vpack.c.bf16 %v4988_v12, %v5002_v57  ;;  %1360 = vst.msk [vmem:[#allocation2 + $0x24] sm:$0xf] %vm1352_vm0, %v3755_v31  ;;  %v5946_v44 = vrot.slane %v4969_v48, 1  ;;  %v5311_v20 = vpop.permute.xlu1 %1123  ;;  %v5313_v12 = vpop.permute.xlu0 %1118 }
 0x304   : > { %v1166_v61 = vsel %vm1158_vm2, %v5943_v47, %v5942_v8  ;;  %v3754_v54 = vpack.c.bf16 %v5255_v15, %v5255_v15  ;;  %v3757_v11 = vpack.c.bf16 %v5270_v32, %v5270_v32  ;;  %v5945_v26 = vmov %v5943_v47 }
 0x305   : > { %3960 = vmatmul.mubr.msk.bf16.vlgmr.msra.gmra.mxu0 %vm869_vm15, %v5944_v10  ;;  %v1167_v37 = vsel %vm1158_vm2, %v5946_v44, %v5945_v26  ;;  %v5309_v16 = vmul.f32 %v4944_v0, %v1166_v61  ;;  %v1156_v57 = vrot.slane %v5134_v62, 1  ;;  %v1154_v42 = vrot.slane %v5142_v23, 1 }
 0x306   : > { %3963 = vmatprep.mubr.msk.bf16.mxu0 %vm869_vm15, %v1273_v6  ;;  %3994 = vmatpush3.bf16.msra.mxu0 %v5011_v63  ;;  %1359 = vst.msk [vmem:[#allocation2 + $0x20] sm:$0xf] %vm1352_vm0, %v3754_v54  ;;  %v3756_v48 = vpack.c.bf16 %v5286_v25, %v5286_v25  ;;  %v5323_v0 = vmul.f32 %v4946_v36, %v1167_v37  ;;  %1362 = vst.msk [vmem:[#allocation2 + $0x2c] sm:$0xf] %vm1352_vm0, %v3757_v11  ;;  %v5947_v22 = vrot.slane %v5060_v58, 1 }
 0x307   : > { %v3787_v41 = vpack.c.bf16 %v5309_v16, %v5309_v16  ;;  %v5948_v63 = vmov %v5942_v8  ;;  %v5949_v46 = vrot.slane %v5091_v50, 7  ;;  %v5950_v36 = vrot.slane %v5060_v58, 7  ;;  %4143 = vmatprep.subr.msk.bf16.mxu0 %vm894_vm14, %v5291_v24  ;;  %v5395_v37 = vld [vmem:[%s5908_s8 + $0xc] sm:$0x3] }
 0x308   : > { %v1164_v23 = vsel %vm1158_vm2, %v1151_v45, %v5947_v22  ;;  %v1165_v31 = vsel %vm1158_vm2, %v5948_v63, %v1151_v45  ;;  %v1155_v8 = vrot.slane %v5193_v29, 1  ;;  %1361 = vst.msk [vmem:[#allocation2 + $0x28] sm:$0xf] %vm1352_vm0, %v3756_v48  ;;  %v3786_v4 = vpack.c.bf16 %v5323_v0, %v5323_v0  ;;  %v1238_v48 = vpop.permute.xlu0 %1237 }
 0x309   : > { %v1034_v1 = vsel %vm1029_vm1, %v5950_v36, %v5949_v46  ;;  %v5349_v47 = vmul.f32 %v5105_v2, %v1165_v31  ;;  %v5352_v45 = vmul.f32 %v5103_v17, %v1164_v23  ;;  %1506 = vst.msk [vmem:[#allocation2 + $0xc4] sm:$0xf] %vm1352_vm0, %v3787_v41  ;;  %v5951_v61 = vmov %v5950_v36 }
 0x30a   : > { %v1035_v6 = vsel %vm1029_vm1, %v1020_v33, %v5951_v61  ;;  %v5362_v54 = vmul.f32 %v5046_v51, %v1034_v1  ;;  %v1032_v2 = vsel %vm1029_vm1, %v1023_v28, %v1024_v19  ;;  %v5952_v17 = vmov %v5949_v46  ;;  %1505 = vst.msk [vmem:[#allocation2 + $0xc0] sm:$0xf] %vm1352_vm0, %v3786_v4 }
 0x30b   : > { %v1033_v10 = vsel %vm1029_vm1, %v5952_v17, %v1023_v28  ;;  %v1289_v11 = vpack.c.bf16 %v5213_v30, %v5210_v3  ;;  %v3788_v27 = vpack.c.bf16 %v5349_v47, %v5349_v47  ;;  %v3789_v51 = vpack.c.bf16 %v5352_v45, %v5352_v45 }
 0x30c   : > { %v5380_v33 = vmul.f32 %v5048_v59, %v1035_v6  ;;  %v3759_v26 = vpack.c.bf16 %v5362_v54, %v5362_v54  ;;  %v5385_v44 = vmul.f32 %v5231_v49, %v1033_v10  ;;  %v1139_v28 = vmul.f32 %v5229_v60, %v1032_v2  ;;  %v1243_v59 = vpop.permute.xlu1 %1242  ;;  %v1248_v17 = vpop.permute.xlu0 %1247 }
 0x30d   : > { %v5953_v3 = vrot.slane %v5091_v50, 1  ;;  %v5954_v41 = vpack.c.bf16 %v5053_v34, %v4990_v13  ;;  %v1274_v60 = vpack.c.bf16 %v5250_v18, %v5255_v15  ;;  %1507 = vst.msk [vmem:[#allocation2 + $0xc8] sm:$0xf] %vm1352_vm0, %v3788_v27  ;;  %1508 = vst.msk [vmem:[#allocation2 + $0xcc] sm:$0xf] %vm1352_vm0, %v3789_v51  ;;  %v5956_v23 = vrot.slane %v5060_v58, 1 }
 0x30e   : > { %v3758_v49 = vpack.c.bf16 %v5380_v33, %v5380_v33  ;;  %v1157_v34 = vrot.slane %v5164_v14, 1  ;;  %v1275_v18 = vpack.c.bf16 %v5270_v32, %v5286_v25  ;;  %1364 = vst.msk [vmem:[#allocation2 + $0x34] sm:$0xf] %vm1352_vm0, %v3759_v26  ;;  %v3760_v50 = vpack.c.bf16 %v5385_v44, %v5385_v44 }
 0x30f   : > { %v1162_v30 = vsel %vm1158_vm2, %v5953_v3, %v1154_v42  ;;  %3978 = vmatmul.mubr.msk.bf16.vlgmr.msra.gmra.mxu1 %vm869_vm15, %v5954_v41  ;;  %v5955_v22 = vmov %v5953_v3  ;;  %v3761_v58 = vpack.c.bf16 %v1139_v28, %v1139_v28  ;;  %3964 = vmatmul.mubr.msk.bf16.gmra.mxu0 %vm869_vm15, %v1274_v60  ;;  %v1161_v32 = vsel %vm1158_vm2, %v1154_v42, %v1155_v8  ;;  %v4239_v3 = vld [vmem:[#allocation2 + $0x10] sm:$0xff]   ;;  %v4242_v41 = vld [vmem:[#allocation2 + $0x60] sm:$0xff]   ;;  %v4243_v60 = vld [vmem:[#allocation2 + $0x18] sm:$0xff]  }
 0x310   : > { %v1163_v63 = vsel %vm1158_vm2, %v5956_v23, %v5955_v22  ;;  %v1266_v13 = vmul.f32 %v5157_v40, %v1162_v30  ;;  %4012 = vmatpush3.bf16.msra.mxu1 %v5026_v38  ;;  %3981 = vmatprep.mubr.msk.bf16.mxu1 %vm869_vm15, %v1289_v11  ;;  %1363 = vst.msk [vmem:[#allocation2 + $0x30] sm:$0xf] %vm1352_vm0, %v3758_v49  ;;  %1365 = vst.msk [vmem:[#allocation2 + $0x38] sm:$0xf] %vm1352_vm0, %v3760_v50  ;;  %v5957_v46 = vrot.slane %v5164_v14, 7  ;;  %v1253_v2 = vpop.permute.xlu1 %1252  ;;  %v4244_v49 = vld [vmem:[#allocation2 + $0x20] sm:$0xff]  }
 0x311   : > { %v1265_v40 = vmul.f32 %v5159_v21, %v1163_v63  ;;  %v1160_v38 = vsel %vm1158_vm2, %v1155_v8, %v1156_v57  ;;  %3967 = vmatprep.mubr.msk.bf16.mxu0 %vm869_vm15, %v1275_v18  ;;  %1366 = vst.msk [vmem:[#allocation2 + $0x3c] sm:$0xf] %vm1352_vm0, %v3761_v58  ;;  %v1267_v25 = vmul.f32 %v1238_v48, %v1161_v32  ;;  %v5958_v21 = vrot.slane %v5134_v62, 7  ;;  %v3675_v30 = vld [vmem:[%s5908_s8 + $0xe] sm:$0x3]  ;;  %v4254_v18 = vld [vmem:[#allocation2 + $0xa0] sm:$0xff]  }
 0x312   : > { %v3791_v15 = vpack.c.bf16 %v1266_v13, %v1266_v13  ;;  %v1268_v31 = vmul.f32 %v1243_v59, %v1160_v38  ;;  %4144 = vmatprep.subr.msk.bf16.mxu1 %vm894_vm14, %v5395_v37  ;;  %v1159_v29 = vsel %vm1158_vm2, %v1156_v57, %v1157_v34  ;;  %v1291_v62 = vpack.c.bf16 %v5352_v45, %v5349_v47  ;;  %v4241_v59 = vld [vmem:[#allocation2 + $0x58] sm:$0xff]   ;;  %v4245_v22 = vld [vmem:[#allocation2 + $0x68] sm:$0xff]   ;;  %v4256_v32 = vld [vmem:[#allocation2 + $0xb0] sm:$0xff]  }
 0x313   : > { %v1030_v36 = vsel %vm1029_vm1, %v5958_v21, %v5957_v46  ;;  %v5959_v1 = vmov %v5958_v21  ;;  %v3790_v8 = vpack.c.bf16 %v1265_v40, %v1265_v40  ;;  %v3792_v14 = vpack.c.bf16 %v1267_v25, %v1267_v25  ;;  %v4247_v23 = vld [vmem:[#allocation2 + $0x28] sm:$0xff]   ;;  %v4258_v46 = vld [vmem:[#allocation2 + $0x20] sm:$0xff]   ;;  %v4259_v21 = vld [vmem:[#allocation2 + $0xb8] sm:$0xff]  }
 0x314   : > { %v1031_v42 = vsel %vm1029_vm1, %v1024_v19, %v5959_v1  ;;  %1510 = vst.msk [vmem:[#allocation2 + $0xd4] sm:$0xf] %vm1352_vm0, %v3791_v15  ;;  %v1141_v61 = vmul.f32 %v5311_v20, %v1030_v36  ;;  %v3793_v6 = vpack.c.bf16 %v1268_v31, %v1268_v31  ;;  %v1290_v19 = vpack.c.bf16 %v5309_v16, %v5323_v0  ;;  %v4252_v58 = vld [vmem:[#allocation2 + $0x88] sm:$0xff]   ;;  %v4260_v36 = vld [vmem:[#allocation2 + $0xc0] sm:$0xff]  }
 0x315   : > { %v1140_v4 = vmul.f32 %v5313_v12, %v1031_v42  ;;  %1509 = vst.msk [vmem:[#allocation2 + $0xd0] sm:$0xf] %vm1352_vm0, %v3790_v8  ;;  %v5960_v20 = vrot.slane %v4941_v35, 1  ;;  %1511 = vst.msk [vmem:[#allocation2 + $0xd8] sm:$0xf] %vm1352_vm0, %v3792_v14  ;;  %v1269_v57 = vmul.f32 %v1248_v17, %v1159_v29  ;;  %v1276_v16 = vpack.c.bf16 %v5362_v54, %v5380_v33  ;;  %v4237_v54 = vld [vmem:[#allocation2] sm:$0xff]  }
 0x316   : > { %v3763_v10 = vpack.c.bf16 %v1141_v61, %v1141_v61  ;;  %1512 = vst.msk [vmem:[#allocation2 + $0xdc] sm:$0xf] %vm1352_vm0, %v3793_v6  ;;  %v1277_v53 = vpack.c.bf16 %v1139_v28, %v5385_v44  ;;  %v1292_v47 = vpack.c.bf16 %v1266_v13, %v1265_v40  ;;  %v1293_v45 = vpack.c.bf16 %v1268_v31, %v1267_v25  ;;  %v4240_v33 = vld [vmem:[#allocation2 + $0x50] sm:$0xff]   ;;  %v4238_v44 = vld [vmem:[#allocation2 + $0x8] sm:$0xff]   ;;  %v4249_v13 = vld [vmem:[#allocation2 + $0x78] sm:$0xff]  }
 0x317   : > { %v3762_v12 = vpack.c.bf16 %v1140_v4, %v1140_v4  ;;  %v1174_v11 = vsel %vm1158_vm2, %v1157_v34, %v5960_v20  ;;  %3982 = vmatmul.mubr.msk.bf16.gmra.mxu1 %vm869_vm15, %v1290_v19  ;;  %v3794_v35 = vpack.c.bf16 %v1269_v57, %v1269_v57  ;;  %3968 = vmatmul.mubr.msk.bf16.gmra.mxu0 %vm869_vm15, %v1276_v16  ;;  %v2389_v28 = vsel %vm894_vm14, %v5291_v24, 0  ;;  %v3692_v24 = vld [vmem:[%s5908_s8 + $0x10] sm:$0x3]  ;;  %v4250_v34 = vld [vmem:[#allocation2 + $0x80] sm:$0xff]   ;;  %v4255_v15 = vld [vmem:[#allocation2 + $0xa8] sm:$0xff]  }
 0x318   : > { %v1270_v27 = vmul.f32 %v1253_v2, %v1174_v11  ;;  %1368 = vst.msk [vmem:[#allocation2 + $0x44] sm:$0xf] %vm1352_vm0, %v3763_v10  ;;  %3985 = vmatprep.mubr.msk.bf16.mxu1 %vm869_vm15, %v1291_v62  ;;  %3971 = vmatprep.mubr.msk.bf16.mxu0 %vm869_vm15, %v1277_v53  ;;  %v1278_v51 = vpack.c.bf16 %v1141_v61, %v1140_v4  ;;  %v2588_v48 = vsel %vm894_vm14, %v5395_v37, 0  ;;  %v4246_v37 = vld [vmem:[#allocation2 + $0x70] sm:$0xff]   ;;  %v4251_v50 = vld [vmem:[#allocation2 + $0x38] sm:$0xff]   ;;  %v2787_v38 = vsel %vm894_vm14, %v3675_v30, 0 }
 0x319   : > { %1367 = vst.msk [vmem:[#allocation2 + $0x40] sm:$0xf] %vm1352_vm0, %v3762_v12  ;;  %1513 = vst.msk [vmem:[#allocation2 + $0xe0] sm:$0xf] %vm1352_vm0, %v3794_v35  ;;  %v4248_v63 = vld [vmem:[#allocation2 + $0x30] sm:$0xff]   ;;  %v4257_v25 = vld [vmem:[#allocation2 + $0x18] sm:$0xff]  }
 0x31a   : > { %v3795_v0 = vpack.c.bf16 %v1270_v27, %v1270_v27  ;;  %v1294_v26 = vpack.c.bf16 %v1270_v27, %v1269_v57  ;;  %v4253_v40 = vld [vmem:[#allocation2 + $0x10] sm:$0xff]   ;;  %v2986_v31 = vsel %vm894_vm14, %v3692_v24, 0  ;;  %v4261_v1 = vld [vmem:[#allocation2 + $0x28] sm:$0xff]   ;;  %v4265_v61 = vld [vmem:[#allocation2 + $0x38] sm:$0xff]  }
 0x31b   : > { %v4262_v42 = vld [vmem:[#allocation2 + $0x30] sm:$0xff]   ;;  %v4263_v8 = vld [vmem:[#allocation2 + $0xc8] sm:$0xff]   ;;  %v4268_v29 = vld [vmem:[#allocation2 + $0x60] sm:$0xff]  }
 0x31c   : > { %1514 = vst.msk [vmem:[#allocation2 + $0xe4] sm:$0xf] %vm1352_vm0, %v3795_v0  ;;  %v4264_v4 = vld [vmem:[#allocation2 + $0xd0] sm:$0xff]   ;;  %v4269_v2 = vld [vmem:[#allocation2 + $0x48] sm:$0xff]   ;;  %v4273_v10 = vld [vmem:[#allocation2 + $0xb8] sm:$0xff]  }
 0x31d   : > { %v4267_v6 = vld [vmem:[#allocation2 + $0xd8] sm:$0xff]   ;;  %v4270_v17 = vld [vmem:[#allocation2 + $0xb0] sm:$0xff]   ;;  %v4271_v19 = vld [vmem:[#allocation2 + $0x68] sm:$0xff]  }
 0x31e   : > { %v4272_v12 = vld [vmem:[#allocation2 + $0x70] sm:$0xff]   ;;  %v4274_v20 = vld [vmem:[#allocation2 + $0xc0] sm:$0xff]   ;;  %v4275_v11 = vld [vmem:[#allocation2 + $0x78] sm:$0xff]  }
 0x31f   : > { %3986 = vmatmul.mubr.msk.bf16.gmra.mxu1 %vm869_vm15, %v1292_v47  ;;  %3972 = vmatmul.mubr.msk.bf16.gmra.mxu0 %vm869_vm15, %v1278_v51  ;;  %v4276_v62 = vld [vmem:[#allocation2 + $0x80] sm:$0xff]   ;;  %v4277_v57 = vld [vmem:[#allocation2 + $0xc8] sm:$0xff]   ;;  %v4278_v27 = vld [vmem:[#allocation2 + $0xd0] sm:$0xff]  }
 0x320   : > { %3989 = vmatprep.mubr.msk.bf16.mxu1 %vm869_vm15, %v1293_v45  ;;  %3995 = vmatprep.mubr.msk.bf16.mxu0 %vm869_vm15, %v4237_v54  ;;  %v4266_v14 = vld [vmem:[#allocation2 + $0x40] sm:$0xff]   ;;  %v4279_v16 = vld [vmem:[#allocation2 + $0x88] sm:$0xff]   ;;  %v4280_v53 = vld [vmem:[#allocation2 + $0x90] sm:$0xff]  }
 0x321   : > { %v4281_v35 = vld [vmem:[#allocation2 + $0xd8] sm:$0xff]   ;;  %v4284_v45 = vld [vmem:[#allocation2 + $0xe8] sm:$0xff]   ;;  %v3148_v54 = vld [vmem:[%s5910_s10] sm:$0x3] }
 0x322   : > { %v4283_v0 = vld [vmem:[#allocation2 + $0x98] sm:$0xff]   ;;  %v862_v51 = vld [vmem:[%s5906_s6] sm:$0x3] }
 0x323   : > { %v4282_v47 = vld [vmem:[#allocation2 + $0xe0] sm:$0xff]  }
 0x327   : > { %3990 = vmatmul.mubr.msk.bf16.gmra.mxu1 %vm869_vm15, %v1294_v26  ;;  %3996 = vmatmul.mubr.msk.bf16.vlgmr.msra.gmra.mxu0 %vm869_vm15, %v4238_v44  ;;  %v3274_v26 = vsel %vm894_vm14, %v862_v51, 0 }
 0x328   : > { %4013 = vmatprep.mubr.msk.bf16.mxu1 %vm869_vm15, %v4240_v33  ;;  %3999 = vmatprep.mubr.msk.bf16.mxu0 %vm869_vm15, %v4239_v3  ;;  %v3174_v33 = vsel %vm894_vm14, %v3148_v54, 0 }
 0x329   : > { %4030 = vmatpush3.bf16.msra.mxu0 %v2389_v28 }
 0x32a   : > { %4145 = vmatprep.subr.msk.bf16.mxu0 %vm894_vm14, %v3675_v30 }
 0x32f   : > { %4014 = vmatmul.mubr.msk.bf16.vlgmr.msra.gmra.mxu1 %vm869_vm15, %v4241_v59  ;;  %4000 = vmatmul.mubr.msk.bf16.gmra.mxu0 %vm869_vm15, %v4243_v60 }
 0x330   : > { %4048 = vmatpush3.bf16.msra.mxu1 %v2588_v48  ;;  %4017 = vmatprep.mubr.msk.bf16.mxu1 %vm869_vm15, %v4242_v41 }
 0x331   : > { %4146 = vmatprep.subr.msk.bf16.mxu1 %vm894_vm14, %v3692_v24  ;;  %4003 = vmatprep.mubr.msk.bf16.mxu0 %vm869_vm15, %v4244_v49 }
 0x337   : > { %4018 = vmatmul.mubr.msk.bf16.gmra.mxu1 %vm869_vm15, %v4245_v22  ;;  %4004 = vmatmul.mubr.msk.bf16.gmra.mxu0 %vm869_vm15, %v4247_v23 }
 0x338   : > { %4021 = vmatprep.mubr.msk.bf16.mxu1 %vm869_vm15, %v4246_v37  ;;  %4007 = vmatprep.mubr.msk.bf16.mxu0 %vm869_vm15, %v4248_v63 }
 0x33f   : > { %4022 = vmatmul.mubr.msk.bf16.gmra.mxu1 %vm869_vm15, %v4249_v13  ;;  %4008 = vmatmul.mubr.msk.bf16.gmra.mxu0 %vm869_vm15, %v4251_v50 }
 0x340   : > { %4025 = vmatprep.mubr.msk.bf16.mxu1 %vm869_vm15, %v4250_v34  ;;  %4031 = vmatprep.mubr.msk.bf16.mxu0 %vm869_vm15, %v4254_v18 }
 0x347   : > { %4026 = vmatmul.mubr.msk.bf16.gmra.mxu1 %vm869_vm15, %v4252_v58  ;;  %4032 = vmatmul.mubr.msk.bf16.vlgmr.msra.gmra.mxu0 %vm869_vm15, %v4255_v15 }
 0x348   : > { %4049 = vmatprep.mubr.msk.bf16.mxu1 %vm869_vm15, %v4253_v40  ;;  %4035 = vmatprep.mubr.msk.bf16.mxu0 %vm869_vm15, %v4256_v32 }
 0x349   : > { %4066 = vmatpush3.bf16.msra.mxu0 %v2787_v38 }
 0x34a   : > { %4147 = vmatprep.subr.msk.bf16.mxu0 %vm894_vm14, %v3148_v54 }
 0x34f   : > { %4050 = vmatmul.mubr.msk.bf16.vlgmr.msra.gmra.mxu1 %vm869_vm15, %v4257_v25  ;;  %4036 = vmatmul.mubr.msk.bf16.gmra.mxu0 %vm869_vm15, %v4259_v21 }
 0x350   : > { %4084 = vmatpush3.bf16.msra.mxu1 %v2986_v31  ;;  %4053 = vmatprep.mubr.msk.bf16.mxu1 %vm869_vm15, %v4258_v46 }
 0x351   : > { %4039 = vmatprep.mubr.msk.bf16.mxu0 %vm869_vm15, %v4260_v36  ;;  %4148 = vmatprep.subr.msk.bf16.mxu1 %vm894_vm14, %v862_v51 }
 0x357   : > { %4054 = vmatmul.mubr.msk.bf16.gmra.mxu1 %vm869_vm15, %v4261_v1  ;;  %4040 = vmatmul.mubr.msk.bf16.gmra.mxu0 %vm869_vm15, %v4263_v8 }
 0x358   : > { %4057 = vmatprep.mubr.msk.bf16.mxu1 %vm869_vm15, %v4262_v42  ;;  %4043 = vmatprep.mubr.msk.bf16.mxu0 %vm869_vm15, %v4264_v4 }
 0x35f   : > { %4058 = vmatmul.mubr.msk.bf16.gmra.mxu1 %vm869_vm15, %v4265_v61  ;;  %4044 = vmatmul.mubr.msk.bf16.gmra.mxu0 %vm869_vm15, %v4267_v6 }
 0x360   : > { %4061 = vmatprep.mubr.msk.bf16.mxu1 %vm869_vm15, %v4266_v14  ;;  %4067 = vmatprep.mubr.msk.bf16.mxu0 %vm869_vm15, %v4268_v29 }
 0x367   : > { %4062 = vmatmul.mubr.msk.bf16.gmra.mxu1 %vm869_vm15, %v4269_v2  ;;  %4068 = vmatmul.mubr.msk.bf16.vlgmr.msra.gmra.mxu0 %vm869_vm15, %v4271_v19 }
 0x368   : > { %4085 = vmatprep.mubr.msk.bf16.mxu1 %vm869_vm15, %v4270_v17  ;;  %4071 = vmatprep.mubr.msk.bf16.mxu0 %vm869_vm15, %v4272_v12 }
 0x369   : > { %4102 = vmatpush3.bf16.msra.mxu0 %v3174_v33 }
 0x36f   : > { %4086 = vmatmul.mubr.msk.bf16.vlgmr.msra.gmra.mxu1 %vm869_vm15, %v4273_v10  ;;  %4072 = vmatmul.mubr.msk.bf16.gmra.mxu0 %vm869_vm15, %v4275_v11 }
 0x370   : > { %4089 = vmatprep.mubr.msk.bf16.mxu1 %vm869_vm15, %v4274_v20  ;;  %4075 = vmatprep.mubr.msk.bf16.mxu0 %vm869_vm15, %v4276_v62 }
 0x371   : > { %4120 = vmatpush3.bf16.msra.mxu1 %v3274_v26 }
 0x377   : > { %4090 = vmatmul.mubr.msk.bf16.gmra.mxu1 %vm869_vm15, %v4277_v57  ;;  %4076 = vmatmul.mubr.msk.bf16.gmra.mxu0 %vm869_vm15, %v4279_v16 }
 0x378   : > { %4093 = vmatprep.mubr.msk.bf16.mxu1 %vm869_vm15, %v4278_v27  ;;  %4079 = vmatprep.mubr.msk.bf16.mxu0 %vm869_vm15, %v4280_v53 }
 0x37f   : > { %4094 = vmatmul.mubr.msk.bf16.gmra.mxu1 %vm869_vm15, %v4281_v35  ;;  %4080 = vmatmul.mubr.msk.bf16.gmra.mxu0 %vm869_vm15, %v4283_v0 }
 0x380   : > { %4097 = vmatprep.mubr.msk.bf16.mxu1 %vm869_vm15, %v4282_v47 }
 0x387   : > { %4098 = vmatmul.mubr.msk.bf16.gmra.mxu1 %vm869_vm15, %v4284_v45 }
 0x388   : > { %4121 = vmatprep.mubr.msk.bf16.mxu1 %vm869_vm15, %v4808_v55 }
 0x38f   : > { %4122 = vmatmul.mubr.msk.bf16.vlgmr.msra.gmra.mxu1 %vm869_vm15, %v4810_v56 }
 0x390   : > { %4125 = vmatprep.mubr.msk.bf16.mxu1 %vm869_vm15, %v4816_v5 }
 0x397   : > { %4126 = vmatmul.mubr.msk.bf16.gmra.mxu1 %vm869_vm15, %v4835_v39 }
 0x398   : > { %4129 = vmatprep.mubr.msk.bf16.mxu1 %vm869_vm15, %v4839_v43 }
 0x39f   : > { %4130 = vmatmul.mubr.msk.bf16.gmra.mxu1 %vm869_vm15, %v4855_v7 }
 0x3a0   : > { %4133 = vmatprep.mubr.msk.bf16.mxu1 %vm869_vm15, %v4859_v52 }
 0x3a7   : > { %4134 = vmatmul.mubr.msk.bf16.gmra.mxu1 %vm869_vm15, %v4869_v9 }
 0x3a8   : > { %v3943_v55 = vpop.f32.mrf.mxu1 }
 0x3aa   : > { %v1580_v44 = vpop.f32.mrf.mxu1 }
 0x3ac   : > { %v3944_v28 = vpop.f32.mrf.mxu1 }
 0x3ae   : > { %v1583_v3 = vpop.f32.mrf.mxu1 }
 0x3b0   : > { %v3947_v56 = vpop.f32.mrf.mxu1 }
 0x3b2   : > { %v1596_v30 = vpop.f32.mrf.mxu1 }
 0x3b4   : > { %v3948_v59 = vpop.f32.mrf.mxu1 }
 0x3b6   : > { %v1599_v5 = vpop.f32.mrf.mxu1 }
 0x3b9   : > { %v3951_v39 = vpop.f32.mrf.mxu1 }
 0x3bb   : > { %v1612_v48 = vpop.f32.mrf.mxu1 }
 0x3bd   : > { %v3952_v41 = vpop.f32.mrf.mxu1 }
 0x3bf   : > { %v1615_v43 = vpop.f32.mrf.mxu1 }
 0x3c1   : > { %v3955_v24 = vpop.f32.mrf.mxu1 }
 0x3c3   : > { %v1628_v49 = vpop.f32.mrf.mxu1 }
 0x3c5   : > { %v3961_v60 = vpop.f32.mrf.mxu0  ;;  %v3956_v7 = vpop.f32.mrf.mxu1 }
 0x3c6   : > { %v1713_v22 = vadd.f32 %v3961_v60, %v3943_v55 }
 0x3c7   : > { %v1704_v37 = vpop.f32.mrf.mxu0  ;;  %v1631_v52 = vpop.f32.mrf.mxu1 }
 0x3c8   : > { %v1705_v23 = vadd.f32 %v1704_v37, %v1580_v44 }
 0x3c9   : > { %v3962_v63 = vpop.f32.mrf.mxu0 }
 0x3ca   : > { %v1716_v13 = vadd.f32 %v3962_v63, %v3944_v28 }
 0x3cb   : > { %v1707_v34 = vpop.f32.mrf.mxu0 }
 0x3cc   : > { %v1708_v50 = vadd.f32 %v1707_v34, %v1583_v3 }
 0x3cf   : > { %v3979_v18 = vpop.f32.mrf.mxu1  ;;  %v3965_v40 = vpop.f32.mrf.mxu0 }
 0x3d0   : > { %v5569_v58 = vadd.f32 %v3979_v18, %v1713_v22  ;;  %v1729_v38 = vadd.f32 %v3965_v40, %v3947_v56 }
 0x3d1   : > { %v1830_v9 = vpop.f32.mrf.mxu1  ;;  %v1720_v25 = vpop.f32.mrf.mxu0 }
 0x3d2   : > { %v5571_v15 = vadd.f32 %v1830_v9, %v1705_v23  ;;  %v1721_v46 = vadd.f32 %v1720_v25, %v1596_v30 }
 0x3d3   : > { %v3980_v32 = vpop.f32.mrf.mxu1  ;;  %v3966_v36 = vpop.f32.mrf.mxu0 }
 0x3d4   : > { %v5573_v31 = vadd.f32 %v3980_v32, %v1716_v13  ;;  %v1732_v42 = vadd.f32 %v3966_v36, %v3948_v59 }
 0x3d5   : > { %v1833_v21 = vpop.f32.mrf.mxu1  ;;  %v1723_v4 = vpop.f32.mrf.mxu0 }
 0x3d6   : > { %v5575_v1 = vadd.f32 %v1833_v21, %v1708_v50  ;;  %v1724_v14 = vadd.f32 %v1723_v4, %v1599_v5 }
 0x3d7   : > { %v3983_v8 = vpop.f32.mrf.mxu1  ;;  %v3969_v29 = vpop.f32.mrf.mxu0 }
 0x3d8   : > { %v5577_v61 = vadd.f32 %v3983_v8, %v1729_v38  ;;  %v1745_v17 = vadd.f32 %v3969_v29, %v3951_v39 }
 0x3d9   : > { %v1846_v6 = vpop.f32.mrf.mxu1  ;;  %v1736_v12 = vpop.f32.mrf.mxu0 }
 0x3da   : > { %v5579_v2 = vadd.f32 %v1846_v6, %v1721_v46  ;;  %v1737_v20 = vadd.f32 %v1736_v12, %v1612_v48 }
 0x3db   : > { %v3984_v19 = vpop.f32.mrf.mxu1  ;;  %v3970_v62 = vpop.f32.mrf.mxu0 }
 0x3dc   : > { %v5581_v10 = vadd.f32 %v3984_v19, %v1732_v42  ;;  %v1748_v27 = vadd.f32 %v3970_v62, %v3952_v41 }
 0x3dd   : > { %v1849_v11 = vpop.f32.mrf.mxu1  ;;  %v1739_v53 = vpop.f32.mrf.mxu0 }
 0x3de   : > { %v5583_v57 = vadd.f32 %v1849_v11, %v1724_v14  ;;  %v1740_v0 = vadd.f32 %v1739_v53, %v1615_v43 }
 0x3df   : > { %v3987_v16 = vpop.f32.mrf.mxu1  ;;  %v3973_v45 = vpop.f32.mrf.mxu0 }
 0x3e0   : > { %v5585_v35 = vadd.f32 %v3987_v16, %v1745_v17  ;;  %v1761_v51 = vadd.f32 %v3973_v45, %v3955_v24 }
 0x3e1   : > { %v1862_v47 = vpop.f32.mrf.mxu1  ;;  %v1752_v26 = vpop.f32.mrf.mxu0 }
 0x3e2   : > { %v5587_v54 = vadd.f32 %v1862_v47, %v1737_v20  ;;  %v1753_v44 = vadd.f32 %v1752_v26, %v1628_v49 }
 0x3e3   : > { %v3988_v33 = vpop.f32.mrf.mxu1  ;;  %v3974_v3 = vpop.f32.mrf.mxu0 }
 0x3e4   : > { %v5589_v55 = vadd.f32 %v3988_v33, %v1748_v27  ;;  %v1764_v30 = vadd.f32 %v3974_v3, %v3956_v7 }
 0x3e5   : > { %v1865_v28 = vpop.f32.mrf.mxu1  ;;  %v1755_v5 = vpop.f32.mrf.mxu0 }
 0x3e6   : > { %v5591_v56 = vadd.f32 %v1865_v28, %v1740_v0  ;;  %v1756_v48 = vadd.f32 %v1755_v5, %v1631_v52 }
 0x3e7   : > { %v3991_v59 = vpop.f32.mrf.mxu1  ;;  %v5595_v43 = vpop.f32.mrf.mxu0 }
 0x3e8   : > { %v5593_v39 = vadd.f32 %v3991_v59, %v1761_v51 }
 0x3e9   : > { %v1878_v41 = vpop.f32.mrf.mxu1  ;;  %v5599_v22 = vpop.f32.mrf.mxu0 }
 0x3ea   : > { %v5597_v60 = vadd.f32 %v1878_v41, %v1753_v44 }
 0x3eb   : > { %v3992_v24 = vpop.f32.mrf.mxu1  ;;  %v5603_v23 = vpop.f32.mrf.mxu0 }
 0x3ec   : > { %5961 = vst [vmem:[#allocation11_spill] sm:$0xff] %v5597_v60  ;;  %v5601_v37 = vadd.f32 %v3992_v24, %v1764_v30 }
 0x3ed   : > { %v1881_v49 = vpop.f32.mrf.mxu1  ;;  %v5607_v13 = vpop.f32.mrf.mxu0 }
 0x3ee   : > { %5962 = vst [vmem:[#allocation12_spill] sm:$0xff] %v5601_v37  ;;  %v5605_v63 = vadd.f32 %v1881_v49, %v1756_v48 }
 0x3ef   : > { %v4015_v7 = vpop.f32.mrf.mxu1  ;;  %v5609_v52 = vpop.f32.mrf.mxu0 }
 0x3f0   : > { %5963 = vst [vmem:[#allocation13_spill] sm:$0xff] %v5605_v63 }
 0x3f1   : > { %v2226_v34 = vpop.f32.mrf.mxu1  ;;  %v5613_v50 = vpop.f32.mrf.mxu0 }
 0x3f3   : > { %v5611_v18 = vpop.f32.mrf.mxu1  ;;  %v5617_v40 = vpop.f32.mrf.mxu0 }
 0x3f5   : > { %v5615_v9 = vpop.f32.mrf.mxu1  ;;  %v5621_v32 = vpop.f32.mrf.mxu0 }
 0x3f7   : > { %v5619_v38 = vpop.f32.mrf.mxu1  ;;  %v5625_v46 = vpop.f32.mrf.mxu0 }
 0x3f9   : > { %v5623_v25 = vpop.f32.mrf.mxu1  ;;  %v5629_v36 = vpop.f32.mrf.mxu0 }
 0x3fb   : > { %v5627_v21 = vpop.f32.mrf.mxu1  ;;  %v5633_v8 = vpop.f32.mrf.mxu0 }
 0x3fd   : > { %v5631_v42 = vpop.f32.mrf.mxu1  ;;  %v5637_v14 = vpop.f32.mrf.mxu0 }
 0x3ff   : > { %v5635_v4 = vpop.f32.mrf.mxu1  ;;  %v5641_v29 = vpop.f32.mrf.mxu0 }
 0x401   : > { %v5639_v6 = vpop.f32.mrf.mxu1  ;;  %v5645_v19 = vpop.f32.mrf.mxu0 }
 0x402   : > { %5965 = vst [vmem:[#allocation15_spill] sm:$0xff] %v5645_v19 }
 0x403   : > { %v5643_v17 = vpop.f32.mrf.mxu1  ;;  %v5649_v20 = vpop.f32.mrf.mxu0 }
 0x404   : > { %5964 = vst [vmem:[#allocation14_spill] sm:$0xff] %v5643_v17  ;;  %5967 = vst [vmem:[#allocation17_spill] sm:$0xff] %v5649_v20 }
 0x405   : > { %v5647_v12 = vpop.f32.mrf.mxu1  ;;  %v5653_v62 = vpop.f32.mrf.mxu0 }
 0x406   : > { %5966 = vst [vmem:[#allocation16_spill] sm:$0xff] %v5647_v12  ;;  %5969 = vst [vmem:[#allocation19_spill] sm:$0xff] %v5653_v62 }
 0x407   : > { %v5651_v11 = vpop.f32.mrf.mxu1  ;;  %v4033_v16 = vpop.f32.mrf.mxu0 }
 0x408   : > { %5968 = vst [vmem:[#allocation18_spill] sm:$0xff] %v5651_v11 }
 0x409   : > { %v5655_v27 = vpop.f32.mrf.mxu1  ;;  %v2425_v0 = vpop.f32.mrf.mxu0 }
 0x40a   : > { %5970 = vst [vmem:[#allocation20_spill] sm:$0xff] %v5655_v27 }
 0x40b   : > { %v5657_v53 = vpop.f32.mrf.mxu1  ;;  %v4034_v45 = vpop.f32.mrf.mxu0 }
 0x40c   : > { %5971 = vst [vmem:[#allocation21_spill] sm:$0xff] %v5657_v53 }
 0x40d   : > { %v5659_v47 = vpop.f32.mrf.mxu1  ;;  %v2428_v33 = vpop.f32.mrf.mxu0 }
 0x40e   : > { %5972 = vst [vmem:[#allocation22_spill] sm:$0xff] %v5659_v47 }
 0x40f   : > { %v4051_v51 = vpop.f32.mrf.mxu1  ;;  %v4037_v44 = vpop.f32.mrf.mxu0 }
 0x411   : > { %v2624_v26 = vpop.f32.mrf.mxu1  ;;  %v5661_v3 = vpop.f32.mrf.mxu0 }
 0x413   : > { %v4052_v28 = vpop.f32.mrf.mxu1  ;;  %v5663_v59 = vpop.f32.mrf.mxu0 }
 0x415   : > { %v2627_v30 = vpop.f32.mrf.mxu1  ;;  %v5667_v48 = vpop.f32.mrf.mxu0 }
 0x417   : > { %v5665_v5 = vpop.f32.mrf.mxu1  ;;  %v5671_v24 = vpop.f32.mrf.mxu0 }
 0x419   : > { %v5669_v41 = vpop.f32.mrf.mxu1  ;;  %v5675_v47 = vpop.f32.mrf.mxu0 }
 0x41a   : > { %5973 = vst [vmem:[#allocation23_spill] sm:$0xff] %v5675_v47  ;;  %v2092_v47 = vadd.f32 %v5595_v43, %v5569_v58  ;;  %v2091_v58 = vadd.f32 %v5607_v13, %v5575_v1  ;;  %v2097_v1 = vadd.f32 %v5617_v40, %v5581_v10  ;;  %v2100_v10 = vadd.f32 %v5625_v46, %v5585_v35 }
 0x41b   : > { %v5673_v49 = vpop.f32.mrf.mxu1  ;;  %v5679_v62 = vpop.f32.mrf.mxu0 }
 0x41c   : > { %5975 = vst [vmem:[#allocation25_spill] sm:$0xff] %v5679_v62 }
 0x41d   : > { %v5677_v53 = vpop.f32.mrf.mxu1  ;;  %v5683_v27 = vpop.f32.mrf.mxu0 }
 0x41e   : > { %5974 = vst [vmem:[#allocation24_spill] sm:$0xff] %v5677_v53  ;;  %5977 = vst [vmem:[#allocation27_spill] sm:$0xff] %v5683_v27  ;;  %v2090_v27 = vadd.f32 %v5599_v22, %v5571_v15  ;;  %v2096_v15 = vadd.f32 %v5609_v52, %v5577_v61 }
 0x41f   : > { %v5681_v63 = vpop.f32.mrf.mxu1  ;;  %v5687_v20 = vpop.f32.mrf.mxu0 }
 0x420   : > { %5976 = vst [vmem:[#allocation26_spill] sm:$0xff] %v5681_v63  ;;  %5979 = vst [vmem:[#allocation29_spill] sm:$0xff] %v5687_v20  ;;  %v2295_v13 = vadd.f32 %v5619_v38, %v2096_v15 }
 0x421   : > { %v5685_v11 = vpop.f32.mrf.mxu1  ;;  %v5691_v12 = vpop.f32.mrf.mxu0 }
 0x422   : > { %5978 = vst [vmem:[#allocation28_spill] sm:$0xff] %v5685_v11  ;;  %5981 = vst [vmem:[#allocation31_spill] sm:$0xff] %v5691_v12  ;;  %v2291_v11 = vadd.f32 %v4015_v7, %v2092_v47  ;;  %v2093_v12 = vadd.f32 %v5603_v23, %v5573_v31  ;;  %v2290_v31 = vadd.f32 %v5615_v9, %v2091_v58  ;;  %v5727_v9 = vld [vmem:[%s5909_s9] ss:$0 sm:$0xff] }
 0x423   : > { %v5689_v37 = vpop.f32.mrf.mxu1  ;;  %v5695_v60 = vpop.f32.mrf.mxu0  ;;  %v2494_v38 = vadd.f32 %v4037_v44, %v2295_v13 }
 0x424   : > { %5980 = vst [vmem:[#allocation30_spill] sm:$0xff] %v5689_v37  ;;  %5983 = vst [vmem:[#allocation33_spill] sm:$0xff] %v5695_v60  ;;  %v2490_v17 = vadd.f32 %v4033_v16, %v2291_v11  ;;  %v2292_v43 = vadd.f32 %v5611_v18, %v2093_v12 }
 0x425   : > { %v5693_v19 = vpop.f32.mrf.mxu1  ;;  %v5701_v63 = vpop.f32.mrf.mxu0 }
 0x426   : > { %5982 = vst [vmem:[#allocation32_spill] sm:$0xff] %v5693_v19  ;;  %5985 = vst [vmem:[#allocation35_spill] sm:$0xff] %v5701_v63  ;;  %v2289_v19 = vadd.f32 %v2226_v34, %v2090_v27  ;;  %v2491_v23 = vadd.f32 %v4034_v45, %v2292_v43  ;;  %v2094_v27 = vadd.f32 %v5613_v50, %v5579_v2 }
 0x427   : > { %v5699_v62 = vpop.f32.mrf.mxu1  ;;  %v4069_v37 = vpop.f32.mrf.mxu0 }
 0x428   : > { %5984 = vst [vmem:[#allocation34_spill] sm:$0xff] %v5699_v62  ;;  %v2488_v63 = vadd.f32 %v2425_v0, %v2289_v19  ;;  %v2689_v62 = vadd.f32 %v4051_v51, %v2490_v17  ;;  %v2489_v19 = vadd.f32 %v2428_v33, %v2290_v31  ;;  %v2690_v61 = vadd.f32 %v4052_v28, %v2491_v23  ;;  %v5986_v23 = vld [vmem:[#allocation24_spill] sm:$0xff] }
 0x429   : > { %v5705_v20 = vpop.f32.mrf.mxu1  ;;  %v2823_v53 = vpop.f32.mrf.mxu0  ;;  %v2293_v2 = vadd.f32 %v5623_v25, %v2094_v27  ;;  %v2098_v0 = vadd.f32 %v5629_v36, %v5587_v54  ;;  %v2299_v33 = vadd.f32 %v5635_v4, %v2100_v10  ;;  %v2099_v54 = vadd.f32 %v5637_v14, %v5591_v56 }
 0x42a   : > { %v2687_v34 = vadd.f32 %v2624_v26, %v2488_v63  ;;  %v2888_v11 = vadd.f32 %v4069_v37, %v2689_v62  ;;  %v2095_v37 = vadd.f32 %v5621_v32, %v5583_v57  ;;  %v2296_v63 = vadd.f32 %v5627_v21, %v2097_v1 }
 0x42b   : > { %v5709_v60 = vpop.f32.mrf.mxu1  ;;  %v4070_v7 = vpop.f32.mrf.mxu0  ;;  %v2688_v62 = vadd.f32 %v2627_v30, %v2489_v19  ;;  %v2101_v57 = vadd.f32 %v5633_v8, %v5589_v55  ;;  %v2492_v46 = vadd.f32 %v5661_v3, %v2293_v2  ;;  %v2693_v21 = vadd.f32 %v5665_v5, %v2494_v38  ;;  %v5988_v19 = vld [vmem:[#allocation11_spill] sm:$0xff]  ;;  %v5991_v2 = vld [vmem:[#allocation26_spill] sm:$0xff]  ;;  %v5992_v38 = vld [vmem:[#allocation16_spill] sm:$0xff] }
 0x42c   : > { %v2886_v52 = vadd.f32 %v2823_v53, %v2687_v34  ;;  %v2889_v16 = vadd.f32 %v4070_v7, %v2690_v61  ;;  %v2294_v47 = vadd.f32 %v5631_v42, %v2095_v37  ;;  %v2495_v36 = vadd.f32 %v5663_v59, %v2296_v63  ;;  %v5989_v61 = vld [vmem:[#allocation15_spill] sm:$0xff] }
 0x42d   : > { %v5716_v22 = vpop.f32.mrf.mxu1  ;;  %v2826_v17 = vpop.f32.mrf.mxu0  ;;  %v2691_v26 = vadd.f32 %v5669_v41, %v2492_v46  ;;  %v2297_v30 = vadd.f32 %v5639_v6, %v2098_v0  ;;  %v2104_v41 = vadd.f32 %v5641_v29, %v5593_v39  ;;  %v2498_v31 = vadd.f32 %v5671_v24, %v2299_v33  ;;  %v5996_v46 = vld [vmem:[#allocation28_spill] sm:$0xff] }
 0x42e   : > { %v2887_v45 = vadd.f32 %v2826_v17, %v2688_v62  ;;  %v2493_v5 = vadd.f32 %v5667_v48, %v2294_v47  ;;  %v2694_v4 = vadd.f32 %v5673_v49, %v2495_v36  ;;  %v2298_v62 = vadd.f32 %v5992_v38, %v2099_v54  ;;  %v5995_v47 = vld [vmem:[#allocation25_spill] sm:$0xff]  ;;  %v5997_v36 = vld [vmem:[#allocation18_spill] sm:$0xff]  ;;  %v5998_v54 = vld [vmem:[#allocation27_spill] sm:$0xff] }
 0x42f   : > { %v4087_v18 = vpop.f32.mrf.mxu1  ;;  %v4073_v40 = vpop.f32.mrf.mxu0  ;;  %v2697_v10 = vadd.f32 %v5991_v2, %v2498_v31 }
 0x430   : > { %v3087_v12 = vadd.f32 %v4087_v18, %v2888_v11  ;;  %v2892_v44 = vadd.f32 %v4073_v40, %v2693_v21  ;;  %v2692_v34 = vadd.f32 %v5986_v23, %v2493_v5  ;;  %v5987_v18 = vld [vmem:[#allocation14_spill] sm:$0xff] }
 0x431   : > { %v3022_v50 = vpop.f32.mrf.mxu1  ;;  %v2839_v35 = vpop.f32.mrf.mxu0  ;;  %v2300_v17 = vadd.f32 %v5987_v18, %v2101_v57 }
 0x432   : > { %v3085_v53 = vadd.f32 %v3022_v50, %v2886_v52  ;;  %v3110_v32 = vadd.f32 %v5727_v9, %v3087_v12  ;;  %v2890_v43 = vadd.f32 %v2839_v35, %v2691_v26  ;;  %v2102_v52 = vadd.f32 %v5989_v61, %v5988_v19  ;;  %v5990_v12 = vld [vmem:[#allocation23_spill] sm:$0xff] }
 0x433   : > { %v4088_v25 = vpop.f32.mrf.mxu1  ;;  %v4074_v8 = vpop.f32.mrf.mxu0  ;;  %v2496_v37 = vadd.f32 %v5990_v12, %v2297_v30  ;;  %v2499_v57 = vadd.f32 %v5995_v47, %v2300_v17  ;;  %v6006_v17 = vld [vmem:[#allocation31_spill] sm:$0xff] }
 0x434   : > { %v3088_v51 = vadd.f32 %v4088_v25, %v2889_v16  ;;  %v3108_v42 = vadd.f32 %v5727_v9, %v3085_v53  ;;  %v3126_v58 = vmax.f32 %v3110_v32, 0.0  ;;  %v2893_v1 = vadd.f32 %v4074_v8, %v2694_v4  ;;  %v5993_v16 = vld [vmem:[#allocation12_spill] sm:$0xff]  ;;  %v5994_v53 = vld [vmem:[#allocation17_spill] sm:$0xff]  ;;  %v5999_v8 = vld [vmem:[#allocation30_spill] sm:$0xff] }
 0x435   : > { %v3025_v55 = vpop.f32.mrf.mxu1  ;;  %v2842_v14 = vpop.f32.mrf.mxu0  ;;  %v2105_v0 = vadd.f32 %v5994_v53, %v5993_v16  ;;  %v2695_v21 = vadd.f32 %v5996_v46, %v2496_v37  ;;  %v2698_v26 = vadd.f32 %v5999_v8, %v2499_v57  ;;  %v6007_v37 = vld [vmem:[#allocation34_spill] sm:$0xff] }
 0x436   : > { %v3111_v28 = vadd.f32 %v5727_v9, %v3088_v51  ;;  %v3086_v3 = vadd.f32 %v3025_v55, %v2887_v45  ;;  %v3124_v6 = vmax.f32 %v3108_v42, 0.0  ;;  %v2891_v50 = vadd.f32 %v2842_v14, %v2692_v34 }
 0x437   : > { %v4091_v56 = vpop.f32.mrf.mxu1  ;;  %v4077_v48 = vpop.f32.mrf.mxu0  ;;  %v2303_v42 = vadd.f32 %v5997_v36, %v2104_v41  ;;  %v2497_v55 = vadd.f32 %v5998_v54, %v2298_v62 }
 0x438   : > { %v3127_v59 = vmax.f32 %v3111_v28, 0.0  ;;  %v3109_v15 = vadd.f32 %v5727_v9, %v3086_v3  ;;  %v3091_v7 = vadd.f32 %v4091_v56, %v2892_v44  ;;  %v2896_v45 = vadd.f32 %v4077_v48, %v2697_v10  ;;  %v6000_v56 = vld [vmem:[#allocation20_spill] sm:$0xff]  ;;  %v6008_v10 = vld [vmem:[#allocation22_spill] sm:$0xff] }
 0x439   : > { %v3038_v11 = vpop.f32.mrf.mxu1  ;;  %v2855_v24 = vpop.f32.mrf.mxu0  ;;  %v2301_v14 = vadd.f32 %v6000_v56, %v2102_v52 }
 0x43a   : > { %v3141_v27 = vpack.c.bf16 %v3127_v59, %v3126_v58  ;;  %v3125_v49 = vmax.f32 %v3109_v15, 0.0  ;;  %v3089_v13 = vadd.f32 %v3038_v11, %v2890_v43  ;;  %v3114_v39 = vadd.f32 %v5727_v9, %v3091_v7  ;;  %v6001_v59 = vld [vmem:[#allocation29_spill] sm:$0xff]  ;;  %v6002_v15 = vld [vmem:[#allocation32_spill] sm:$0xff] }
 0x43b   : > { %v4092_v29 = vpop.f32.mrf.mxu1  ;;  %v4078_v35 = vpop.f32.mrf.mxu0  ;;  %v2894_v5 = vadd.f32 %v2855_v24, %v2695_v21  ;;  %v2502_v43 = vadd.f32 %v6001_v59, %v2303_v42  ;;  %v2696_v7 = vadd.f32 %v6002_v15, %v2497_v55  ;;  %v2500_v19 = vadd.f32 %v6006_v17, %v2301_v14 }
 0x43c   : > { %v3140_v63 = vpack.c.bf16 %v3125_v49, %v3124_v6  ;;  %v3092_v40 = vadd.f32 %v4092_v29, %v2893_v1  ;;  %v3112_v32 = vadd.f32 %v5727_v9, %v3089_v13  ;;  %v3130_v44 = vmax.f32 %v3114_v39, 0.0  ;;  %v6004_v49 = vld [vmem:[#allocation19_spill] sm:$0xff]  ;;  %v6005_v13 = vld [vmem:[#allocation21_spill] sm:$0xff] }
 0x43d   : > { %v3041_v25 = vpop.f32.mrf.mxu1  ;;  %v2858_v3 = vpop.f32.mrf.mxu0  ;;  %v2897_v11 = vadd.f32 %v4078_v35, %v2698_v26  ;;  %v2304_v18 = vadd.f32 %v6005_v13, %v2105_v0  ;;  %v2701_v39 = vadd.f32 %v6007_v37, %v2502_v43  ;;  %v2699_v53 = vadd.f32 %v5705_v20, %v2500_v19 }
 0x43e   : > { %v3115_v51 = vadd.f32 %v5727_v9, %v3092_v40  ;;  %v3090_v33 = vadd.f32 %v3041_v25, %v2891_v50  ;;  %4103 = vmatprep.mubr.msk.bf16.mxu0 %vm869_vm15, %v3140_v63  ;;  %v3128_v41 = vmax.f32 %v3112_v32, 0.0  ;;  %v2895_v24 = vadd.f32 %v2858_v3, %v2696_v7  ;;  %v6009_v50 = vld [vmem:[#allocation33_spill] sm:$0xff]  ;;  %v6010_v32 = vld [vmem:[#allocation35_spill] sm:$0xff] }
 0x43f   : > { %v4095_v28 = vpop.f32.mrf.mxu1  ;;  %4104 = vmatmul.mubr.msk.bf16.vlgmr.msra.gmra.mxu0 %vm869_vm15, %v3141_v27  ;;  %v4081_v23 = vpop.f32.mrf.mxu0  ;;  %v6003_v27 = vld [vmem:[#allocation13_spill] sm:$0xff]  ;;  %v2503_v40 = vadd.f32 %v6009_v50, %v2304_v18 }
 0x440   : > { %v3131_v30 = vmax.f32 %v3115_v51, 0.0  ;;  %v3113_v4 = vadd.f32 %v5727_v9, %v3090_v33  ;;  %v3095_v58 = vadd.f32 %v4095_v28, %v2896_v45  ;;  %v2103_v1 = vadd.f32 %v6004_v49, %v6003_v27 }
 0x441   : > { %v3054_v31 = vpop.f32.mrf.mxu1  ;;  %v2871_v12 = vpop.f32.mrf.mxu0  ;;  %v2900_v0 = vadd.f32 %v4081_v23, %v2701_v39  ;;  %v2702_v35 = vadd.f32 %v5709_v60, %v2503_v40 }
 0x442   : > { %v3143_v34 = vpack.c.bf16 %v3131_v30, %v3130_v44  ;;  %v3129_v6 = vmax.f32 %v3113_v4, 0.0  ;;  %v3093_v48 = vadd.f32 %v3054_v31, %v2894_v5  ;;  %v3118_v61 = vadd.f32 %v5727_v9, %v3095_v58 }
 0x443   : > { %v4096_v52 = vpop.f32.mrf.mxu1  ;;  %v2302_v63 = vadd.f32 %v6008_v10, %v2103_v1  ;;  %v4082_v16 = vpop.f32.mrf.mxu0  ;;  %v2898_v51 = vadd.f32 %v2871_v12, %v2699_v53 }
 0x444   : > { %v3142_v29 = vpack.c.bf16 %v3129_v6, %v3128_v41  ;;  %v3096_v2 = vadd.f32 %v4096_v52, %v2897_v11  ;;  %v3116_v38 = vadd.f32 %v5727_v9, %v3093_v48  ;;  %v3134_v46 = vmax.f32 %v3118_v61, 0.0 }
 0x445   : > { %v3057_v62 = vpop.f32.mrf.mxu1  ;;  %v2501_v25 = vadd.f32 %v6010_v32, %v2302_v63  ;;  %v2874_v54 = vpop.f32.mrf.mxu0  ;;  %v2901_v44 = vadd.f32 %v4082_v16, %v2702_v35 }
 0x446   : > { %v3119_v47 = vadd.f32 %v5727_v9, %v3096_v2  ;;  %v3094_v57 = vadd.f32 %v3057_v62, %v2895_v24  ;;  %4107 = vmatprep.mubr.msk.bf16.mxu0 %vm869_vm15, %v3142_v29  ;;  %v3132_v42 = vmax.f32 %v3116_v38, 0.0 }
 0x447   : > { %v4099_v21 = vpop.f32.mrf.mxu1  ;;  %4108 = vmatmul.mubr.msk.bf16.gmra.mxu0 %vm869_vm15, %v3143_v34  ;;  %v2700_v20 = vadd.f32 %v5716_v22, %v2501_v25 }
 0x448   : > { %v3135_v45 = vmax.f32 %v3119_v47, 0.0  ;;  %v3117_v33 = vadd.f32 %v5727_v9, %v3094_v57  ;;  %v3099_v36 = vadd.f32 %v4099_v21, %v2900_v0 }
 0x449   : > { %v3070_v55 = vpop.f32.mrf.mxu1  ;;  %v2899_v5 = vadd.f32 %v2874_v54, %v2700_v20 }
 0x44a   : > { %v3145_v8 = vpack.c.bf16 %v3135_v45, %v3134_v46  ;;  %v3133_v26 = vmax.f32 %v3117_v33, 0.0  ;;  %v3097_v28 = vadd.f32 %v3070_v55, %v2898_v51  ;;  %v3122_v30 = vadd.f32 %v5727_v9, %v3099_v36 }
 0x44b   : > { %v4100_v3 = vpop.f32.mrf.mxu1 }
 0x44c   : > { %v3144_v60 = vpack.c.bf16 %v3133_v26, %v3132_v42  ;;  %v3100_v4 = vadd.f32 %v4100_v3, %v2901_v44  ;;  %v3120_v56 = vadd.f32 %v5727_v9, %v3097_v28  ;;  %v3138_v22 = vmax.f32 %v3122_v30, 0.0 }
 0x44d   : > { %v3073_v58 = vpop.f32.mrf.mxu1 }
 0x44e   : > { %v3123_v14 = vadd.f32 %v5727_v9, %v3100_v4  ;;  %v3098_v59 = vadd.f32 %v3073_v58, %v2899_v5  ;;  %4111 = vmatprep.mubr.msk.bf16.mxu0 %vm869_vm15, %v3144_v60  ;;  %v3136_v7 = vmax.f32 %v3120_v56, 0.0 }
 0x44f   : > { %4112 = vmatmul.mubr.msk.bf16.gmra.mxu0 %vm869_vm15, %v3145_v8  ;;  %v4123_v34 = vpop.f32.mrf.mxu1 }
 0x450   : > { %v3139_v43 = vmax.f32 %v3123_v14, 0.0  ;;  %v3121_v15 = vadd.f32 %v5727_v9, %v3098_v59 }
 0x451   : > { %v3310_v6 = vpop.f32.mrf.mxu1 }
 0x452   : > { %v3147_v41 = vpack.c.bf16 %v3139_v43, %v3138_v22  ;;  %v3137_v31 = vmax.f32 %v3121_v15, 0.0 }
 0x453   : > { %v4124_v11 = vpop.f32.mrf.mxu1 }
 0x454   : > { %v3146_v23 = vpack.c.bf16 %v3137_v31, %v3136_v7 }
 0x455   : > { %v3313_v48 = vpop.f32.mrf.mxu1 }
 0x456   : > { %4115 = vmatprep.mubr.msk.bf16.mxu0 %vm869_vm15, %v3146_v23 }
 0x457   : > { %4116 = vmatmul.mubr.msk.bf16.gmra.mxu0 %vm869_vm15, %v3147_v41  ;;  %v4127_v27 = vpop.f32.mrf.mxu1 }
 0x459   : > { %v3326_v49 = vpop.f32.mrf.mxu1 }
 0x45b   : > { %v4128_v1 = vpop.f32.mrf.mxu1 }
 0x45d   : > { %v3329_v13 = vpop.f32.mrf.mxu1 }
 0x45f   : > { %v4131_v19 = vpop.f32.mrf.mxu1 }
 0x461   : > { %v3342_v39 = vpop.f32.mrf.mxu1 }
 0x463   : > { %v4132_v63 = vpop.f32.mrf.mxu1 }
 0x465   : > { %v3345_v16 = vpop.f32.mrf.mxu1 }
 0x467   : > { %v4135_v32 = vpop.f32.mrf.mxu1 }
 0x469   : > { %v3358_v21 = vpop.f32.mrf.mxu1 }
 0x46b   : > { %v4136_v20 = vpop.f32.mrf.mxu1 }
 0x46d   : > { %v3361_v26 = vpop.f32.mrf.mxu1 }
 0x4ff   : > { %v4105_v9 = vpop.f32.mrf.mxu0 }
 0x500   : > { %v3319_v18 = vadd.f32 %v4123_v34, %v4105_v9 }
 0x501   : > { %v3210_v17 = vpop.f32.mrf.mxu0 }
 0x502   : > { %3376 = vst.msk [vmem:[%s4711_s28 + $0x10] sm:$0xff] %vm3373_vm3, %v3319_v18  ;;  %v3311_v61 = vadd.f32 %v3310_v6, %v3210_v17 }
 0x503   : > { %v4106_v52 = vpop.f32.mrf.mxu0 }
 0x504   : > { %3374 = vst.msk [vmem:[%s4711_s28] sm:$0xff] %vm3373_vm3, %v3311_v61  ;;  %v3322_v12 = vadd.f32 %v4124_v11, %v4106_v52 }
 0x505   : > { %v3213_v37 = vpop.f32.mrf.mxu0 }
 0x506   : > { %3377 = vst.msk [vmem:[%s4711_s28 + $0x18] sm:$0xff] %vm3373_vm3, %v3322_v12  ;;  %v3314_v29 = vadd.f32 %v3313_v48, %v3213_v37 }
 0x507   : > { %v4109_v24 = vpop.f32.mrf.mxu0 }
 0x508   : > { %3375 = vst.msk [vmem:[%s4711_s28 + $0x8] sm:$0xff] %vm3373_vm3, %v3314_v29  ;;  %v3335_v2 = vadd.f32 %v4127_v27, %v4109_v24 }
 0x509   : > { %v3226_v10 = vpop.f32.mrf.mxu0 }
 0x50a   : > { %3380 = vst.msk [vmem:[%s4711_s28 + $0x30] sm:$0xff] %vm3373_vm3, %v3335_v2  ;;  %v3327_v50 = vadd.f32 %v3326_v49, %v3226_v10 }
 0x50b   : > { %v4110_v40 = vpop.f32.mrf.mxu0 }
 0x50c   : > { %3378 = vst.msk [vmem:[%s4711_s28 + $0x20] sm:$0xff] %vm3373_vm3, %v3327_v50  ;;  %v3338_v38 = vadd.f32 %v4128_v1, %v4110_v40 }
 0x50d   : > { %v3229_v62 = vpop.f32.mrf.mxu0 }
 0x50e   : > { %3381 = vst.msk [vmem:[%s4711_s28 + $0x38] sm:$0xff] %vm3373_vm3, %v3338_v38  ;;  %v3330_v53 = vadd.f32 %v3329_v13, %v3229_v62 }
 0x50f   : > { %v4113_v0 = vpop.f32.mrf.mxu0 }
 0x510   : > { %3379 = vst.msk [vmem:[%s4711_s28 + $0x28] sm:$0xff] %vm3373_vm3, %v3330_v53  ;;  %v3351_v47 = vadd.f32 %v4131_v19, %v4113_v0 }
 0x511   : > { %v3242_v57 = vpop.f32.mrf.mxu0 }
 0x512   : > { %3384 = vst.msk [vmem:[%s4711_s28 + $0x50] sm:$0xff] %vm3373_vm3, %v3351_v47  ;;  %v3343_v25 = vadd.f32 %v3342_v39, %v3242_v57 }
 0x513   : > { %v4114_v35 = vpop.f32.mrf.mxu0 }
 0x514   : > { %3382 = vst.msk [vmem:[%s4711_s28 + $0x40] sm:$0xff] %vm3373_vm3, %v3343_v25  ;;  %v3354_v46 = vadd.f32 %v4132_v63, %v4114_v35 }
 0x515   : > { %v3245_v45 = vpop.f32.mrf.mxu0 }
 0x516   : > { %3385 = vst.msk [vmem:[%s4711_s28 + $0x58] sm:$0xff] %vm3373_vm3, %v3354_v46  ;;  %v3346_v51 = vadd.f32 %v3345_v16, %v3245_v45 }
 0x517   : > { %v4117_v33 = vpop.f32.mrf.mxu0 }
 0x518   : > { %3383 = vst.msk [vmem:[%s4711_s28 + $0x48] sm:$0xff] %vm3373_vm3, %v3346_v51  ;;  %v3367_v36 = vadd.f32 %v4135_v32, %v4117_v33 }
 0x519   : > { %v3258_v42 = vpop.f32.mrf.mxu0 }
 0x51a   : > { %3388 = vst.msk [vmem:[%s4711_s28 + $0x70] sm:$0xff] %vm3373_vm3, %v3367_v36  ;;  %v3359_v54 = vadd.f32 %v3358_v21, %v3258_v42 }
 0x51b   : > { %v4118_v55 = vpop.f32.mrf.mxu0 }
 0x51c   : > { %3386 = vst.msk [vmem:[%s4711_s28 + $0x60] sm:$0xff] %vm3373_vm3, %v3359_v54  ;;  %v3370_v8 = vadd.f32 %v4136_v20, %v4118_v55 }
 0x51d   : > { %v3261_v44 = vpop.f32.mrf.mxu0 }
 0x51e   : > { %3389 = vst.msk [vmem:[%s4711_s28 + $0x78] sm:$0xff] %vm3373_vm3, %v3370_v8  ;;  %v3362_v28 = vadd.f32 %v3361_v26, %v3261_v44 }
 0x520   : > { %3387 = vst.msk [vmem:[%s4711_s28 + $0x68] sm:$0xff] %vm3373_vm3, %v3362_v28 }
 0x521   : > { %4298 = shalt.err (!%p4295_p11)
}
 0x522   : > { %s4299_s28 = scalar_lea.hbm %s5843_s15, 2048  ;;  %s4303_s3 = scalar_lea.hbm %s5911_s11, 8192 }
 0x523   : > { %p4300_p12 = scmp.ne.s32.totalorder %s5843_s15, %s4299_s28  ;;  %p4304_p1 = scmp.lt.s32.totalorder %s5843_s15, %s5911_s11 }
 0x524   : > { %p4305_p2 = scmp.lt.s32.totalorder %s4303_s3, %s4299_s28 }
 0x525   : > { %p4301_p13 = pnand %p4300_p12, %p4502_p3 }
 0x526   : > { %p4306_p4 = por %p4305_p2, %p4304_p1 }
 0x527   : > { %p4302_p0 = pneg %p4301_p13 }
 0x529   : > { %p4307_p5 = pnand %p4306_p4, %p4302_p0 }
 0x52b   : > { %4310 = shalt.err (!%p4307_p5)
}
 0x52c   : > { %s4389_s4 = smov 128   ;;  %s4390_s16 = smov 8  }
 0x52d   : > { %4149 = dma.vmem_to_hbm [thread:$0]  (%p4502_p3), %s5836_s26, 2048, %s5843_s15, %s5849_s22, %s4389_s4, %s4389_s4, %s4390_s16  }
 0x52e PF: > { %p4155_p6 = scmp.ge.s32.totalorder %s4377_s24, 2  ;;  %s3422_s23 = sand.u32 1, %s4349_s17  }
 0x52f   : > { %s3423_s25 = scalar_lea.sflag [#allocation4], %s3422_s23 }
 0x530   : > { %p4152_p7 = pnand %p4155_p6, %p4511_p8 }
 0x532   : > { %p4153_p9 = pneg %p4152_p7 }
 0x534   : > { %4344 = dma.done.wait (%p4153_p9), %s3423_s25, 2048  }
 0x535   : > { %4346 = vsyncadd (%p4153_p9), %s3423_s25, 4294965248  ;;  %s24_s24 = sadd.s32 1, %s4377_s24   ;;  %s6012_s13 = sld [smem:[#allocation10_spill]] }
 0x536   : > { %p21_p10 = scmp.ge.s32.totalorder %s24_s24, 6   ;;  %s6013_s20 = sld [smem:[#allocation6_spill]] }
 0x537   : > { %s6014_s21 = sld [smem:[#allocation7_spill]]  ;;  %s6017_s17 = smov %s4353_s18 }
 0x538   : > { %s6015_s22 = sld [smem:[#allocation8_spill]]  ;;  %s6018_s18 = smov %s4357_s19 }
 0x539   : > { %s6016_s23 = sld [smem:[#allocation9_spill]]  ;;  %23 = sbr.rel (!%p21_p10) target bundleno = 8 (0x8), region = 144 }
 0x53b   : > { %s6019_s19 = smov %s6012_s13 }
 0x53e   :  { %3428 = vsyncpa [#allocation4], 1 }
 0x53f   :  { %3430 = vsyncpa [#allocation4 + $0x1], 1 }

</bundles_post_ra>
